<compile_context>
chip_gen: v7x
topology: tpu7x:2x2x1
jax: 0.10.0
libtpu: 0.0.40
codegen_flags: <defaults>
</compile_context>

<pallas_src>
import numpy as np
import jax
import jax.numpy as jnp
from jax import lax
from jax.experimental import pallas as pl
from jax.experimental.pallas import tpu as pltpu

# ---- "opt" config (small, consistent with the module) -----------------------
N_CLASSES = 10
CHANNELS = 1
IMG_SIZE = 16
IMG_FLAT = CHANNELS * IMG_SIZE * IMG_SIZE          # 256 (128-aligned)
IN_DIM = N_CLASSES + IMG_FLAT                      # 266 (PyTorch layer-1 fan_in)
HIDDEN = 512
EMB_PAD = 16                                       # classes padded to a sublane multiple
TM_MAX = 256                                       # batch tile: fills MXU rows


def _leaky_relu(x, slope=0.2):
    return jnp.where(x > 0, x, slope * x)


# ---- Pallas kernel -----------------------------------------------------------
def disc_mlp_kernel(x_ref, lab_ref, w1_ref, embt_ref, w2_ref, b2_ref,
                    w3_ref, b3_ref, w4_ref, b4_ref, out_ref):
    tm = x_ref.shape[0]

    # Label-embedding (+b1) contribution via one-hot matmul against the small
    # resident [16, 512] f32 table: only the int32 label is streamed from HBM.
    onehot = (lab_ref[...] ==
              lax.broadcasted_iota(jnp.int32, (tm, EMB_PAD), 1)).astype(jnp.float32)
    emb_b1 = jnp.dot(onehot, embt_ref[...], preferred_element_type=jnp.float32)

    # Layer 1: image part only (K=256, bf16 weights); fold-in emb + b1 (f32 VPU).
    h = jnp.dot(x_ref[...], w1_ref[...], preferred_element_type=jnp.float32)
    h = _leaky_relu(h + emb_b1)

    # Layer 2 (nn.Dropout(0.4) -> identity at inference).
    h = jnp.dot(h.astype(jnp.bfloat16), w2_ref[...],
                preferred_element_type=jnp.float32) + b2_ref[...]
    h = _leaky_relu(h)

    # Layer 3 (nn.Dropout(0.4) -> identity at inference).
    h = jnp.dot(h.astype(jnp.bfloat16), w3_ref[...],
                preferred_element_type=jnp.float32) + b3_ref[...]
    h = _leaky_relu(h)

    # Layer 4: 512 -> 1 as a VPU/XLU lane reduction instead of an N=1 MXU pass.
    out_ref[...] = (jnp.sum(h * w4_ref[...], axis=-1, keepdims=True)
                    + b4_ref[...])


# ---- Parameter preparation (fold embedding+b1, split W1, cast to bf16) ------
def prepare_params(raw):
    w1 = raw["w1"]                                           # [266, 512] f32
    embt = raw["emb"] @ w1[IMG_FLAT:] + raw["b1"]            # [10, 512]  f32 (folded)
    embt = jnp.pad(embt, ((0, EMB_PAD - N_CLASSES), (0, 0))) # [16, 512]  (pad rows unused)
    return {
        "w1_img": w1[:IMG_FLAT].astype(jnp.bfloat16),        # [256, 512] bf16
        "embt": embt,                                        # [16, 512]  f32
        "w2": raw["w2"].astype(jnp.bfloat16),                # [512, 512] bf16
        "b2": raw["b2"],                                     # [1, 512]   f32
        "w3": raw["w3"].astype(jnp.bfloat16),                # [512, 512] bf16
        "b3": raw["b3"],
        "w4_row": raw["w4"].reshape(1, HIDDEN),              # [1, 512]   f32
        "b4": raw["b4"].reshape(1, 1),                       # [1, 1]     f32
    }


# ---- Wrapper -----------------------------------------------------------------
def discriminator_forward(img, labels, prep):
    B = img.shape[0]
    img_flat = img.reshape(B, -1).astype(jnp.bfloat16)           # [B, 256] bf16
    labels2d = labels.astype(jnp.int32).reshape(B, 1)            # [B, 1]   i32

    # Batch tiling: whole batch in one step when small; 256-row tiles otherwise.
    tm = B if B <= TM_MAX else TM_MAX
    n_tiles = pl.cdiv(B, tm)
    Bp = tm * n_tiles
    if Bp != B:
        pad = Bp - B
        img_flat = jnp.pad(img_flat, ((0, pad), (0, 0)))
        labels2d = jnp.pad(labels2d, ((0, pad), (0, 0)))

    # Per-batch-tile x/labels/out blocks; all weights resident (constant index).
    x_spec = pl.BlockSpec((tm, IMG_FLAT), lambda i: (i, 0))
    lab_spec = pl.BlockSpec((tm, 1), lambda i: (i, 0))
    out_spec = pl.BlockSpec((tm, 1), lambda i: (i, 0))

    def resident(shape):
        return pl.BlockSpec(shape, lambda i: (0,) * len(shape))

    weight_bytes = (IMG_FLAT * HIDDEN * 2 + 2 * HIDDEN * HIDDEN * 2   # bf16 matmul weights
                    + EMB_PAD * HIDDEN * 4                            # folded emb+b1 table
                    + HIDDEN * 4                                      # w4 row (f32)
                    + 2 * HIDDEN * 4 + 4)                             # b2, b3, b4 (f32)
    act_bytes = Bp * (IMG_FLAT * 2 + 4 + 4)                           # x (bf16) + label + out
    cost = pl.CostEstimate(
        flops=2 * Bp * (IMG_FLAT * HIDDEN + EMB_PAD * HIDDEN
                        + 2 * HIDDEN * HIDDEN + HIDDEN),
        transcendentals=0,
        bytes_accessed=weight_bytes + act_bytes,
    )

    out = pl.pallas_call(
        disc_mlp_kernel,
        out_shape=jax.ShapeDtypeStruct((Bp, 1), jnp.float32),
        grid=(n_tiles,),
        in_specs=[
            x_spec,
            lab_spec,
            resident((IMG_FLAT, HIDDEN)),   # w1_img
            resident((EMB_PAD, HIDDEN)),    # folded emb @ W1_lab + b1
            resident((HIDDEN, HIDDEN)),     # w2
            resident((1, HIDDEN)),          # b2
            resident((HIDDEN, HIDDEN)),     # w3
            resident((1, HIDDEN)),          # b3
            resident((1, HIDDEN)),          # w4_row
            resident((1, 1)),               # b4
        ],
        out_specs=out_spec,
        compiler_params=pltpu.CompilerParams(
            dimension_semantics=("parallel",),
            vmem_limit_bytes=32 * 1024 * 1024,
        ),
        cost_estimate=cost,
    )(img_flat, labels2d,
      prep["w1_img"], prep["embt"], prep["w2"], prep["b2"],
      prep["w3"], prep["b3"], prep["w4_row"], prep["b4"])

    return out[:B]


# ---- Reference (plain JAX, mirrors the kernel's bf16 precision choices) -----
def discriminator_reference(img, labels, raw):
    B = img.shape[0]
    x = img.reshape(B, -1).astype(jnp.bfloat16).astype(jnp.float32)
    w1 = raw["w1"]
    w1_img = w1[:IMG_FLAT].astype(jnp.bfloat16).astype(jnp.float32)
    emb_w1 = raw["emb"] @ w1[IMG_FLAT:]
    h = x @ w1_img + jnp.take(emb_w1, labels, axis=0) + raw["b1"]
    h = _leaky_relu(h)
    w2 = raw["w2"].astype(jnp.bfloat16).astype(jnp.float32)
    h = _leaky_relu(h.astype(jnp.bfloat16).astype(jnp.float32) @ w2 + raw["b2"])
    w3 = raw["w3"].astype(jnp.bfloat16).astype(jnp.float32)
    h = _leaky_relu(h.astype(jnp.bfloat16).astype(jnp.float32) @ w3 + raw["b3"])
    return h @ raw["w4"] + raw["b4"]


# ---- Deterministic parameter init (PyTorch-like shapes) ---------------------
def init_params(key):
    ks = jax.random.split(key, 5)

    def linear(k, fan_in, fan_out):
        bound = 1.0 / np.sqrt(fan_in)
        kw, kb = jax.random.split(k)
        w = jax.random.uniform(kw, (fan_in, fan_out), jnp.float32, -bound, bound)
        b = jax.random.uniform(kb, (1, fan_out), jnp.float32, -bound, bound)
        return w, b

    emb = jax.random.normal(ks[0], (N_CLASSES, N_CLASSES), jnp.float32)
    w1, b1 = linear(ks[1], IN_DIM, HIDDEN)
    w2, b2 = linear(ks[2], HIDDEN, HIDDEN)
    w3, b3 = linear(ks[3], HIDDEN, HIDDEN)
    w4, b4 = linear(ks[4], HIDDEN, 1)
    return {"emb": emb, "w1": w1, "b1": b1, "w2": w2, "b2": b2,
            "w3": w3, "b3": b3, "w4": w4, "b4": b4}


if __name__ == "__main__":
    key = jax.random.PRNGKey(0)
    k_params, k_img, k_lab = jax.random.split(key, 3)

    raw_params = init_params(k_params)
    prep_params = prepare_params(raw_params)

    B = 2
    img = jax.random.normal(k_img, (B, CHANNELS, IMG_SIZE, IMG_SIZE), jnp.float32)
    labels = jax.random.randint(k_lab, (B,), 0, N_CLASSES, dtype=jnp.int32)

    out = discriminator_forward(img, labels, prep_params)
    out = jax.block_until_ready(out)

    ref = jax.block_until_ready(discriminator_reference(img, labels, raw_params))
    assert out.shape == (B, 1), out.shape
    if not np.allclose(np.asarray(out), np.asarray(ref), rtol=1e-2, atol=1e-2):
        raise AssertionError("Pallas kernel output mismatch vs reference")

    print("KERNEL_OK")
</pallas_src>

<mosaic_0001>
module attributes {stable_mosaic.version = 11 : i64} {
  func.func @disc_mlp_kernel(%arg0: i32, %arg1: memref<2x256xbf16, #tpu.memory_space<vmem>>, %arg2: memref<2x1xi32, #tpu.memory_space<vmem>>, %arg3: memref<256x512xbf16, #tpu.memory_space<vmem>>, %arg4: memref<16x512xf32, #tpu.memory_space<vmem>>, %arg5: memref<512x512xbf16, #tpu.memory_space<vmem>>, %arg6: memref<1x512xf32, #tpu.memory_space<vmem>>, %arg7: memref<512x512xbf16, #tpu.memory_space<vmem>>, %arg8: memref<1x512xf32, #tpu.memory_space<vmem>>, %arg9: memref<1x512xf32, #tpu.memory_space<vmem>>, %arg10: memref<1x1xf32, #tpu.memory_space<vmem>>, %arg11: memref<2x1xf32, #tpu.memory_space<vmem>>) attributes {dimension_semantics = [#tpu.dimension_semantics<parallel>], iteration_bounds = array<i64: 1>, scalar_prefetch = 0 : i64, scratch_operands = 0 : i64, tpu.core_type = #tpu.core_type<tc>, window_params = [{transform_indices = @transform_0, window_bounds = array<i64: 2, 256>}, {transform_indices = @transform_1, window_bounds = array<i64: 2, 1>}, {pipeline_mode = #tpu.pipeline_mode<synchronous>, transform_indices = @transform_2, window_bounds = array<i64: 256, 512>}, {pipeline_mode = #tpu.pipeline_mode<synchronous>, transform_indices = @transform_3, window_bounds = array<i64: 16, 512>}, {pipeline_mode = #tpu.pipeline_mode<synchronous>, transform_indices = @transform_4, window_bounds = array<i64: 512, 512>}, {pipeline_mode = #tpu.pipeline_mode<synchronous>, transform_indices = @transform_5, window_bounds = array<i64: 1, 512>}, {pipeline_mode = #tpu.pipeline_mode<synchronous>, transform_indices = @transform_6, window_bounds = array<i64: 512, 512>}, {pipeline_mode = #tpu.pipeline_mode<synchronous>, transform_indices = @transform_7, window_bounds = array<i64: 1, 512>}, {pipeline_mode = #tpu.pipeline_mode<synchronous>, transform_indices = @transform_8, window_bounds = array<i64: 1, 512>}, {pipeline_mode = #tpu.pipeline_mode<synchronous>, transform_indices = @transform_9, window_bounds = array<i64: 1, 1>}, {transform_indices = @transform_10, window_bounds = array<i64: 2, 1>}]} {
    %c0 = arith.constant 0 : index
    %c0_0 = arith.constant 0 : index
    %0 = vector.load %arg2[%c0, %c0_0] : memref<2x1xi32, #tpu.memory_space<vmem>>, vector<2x1xi32>
    %1 = tpu.iota {dimensions = array<i32: 1>} : vector<2x16xi32>
    %2 = vector.broadcast %0 : vector<2x1xi32> to vector<2x16xi32>
    %3 = arith.cmpi eq, %2, %1 : vector<2x16xi32>
    %4 = arith.extui %3 : vector<2x16xi1> to vector<2x16xi32>
    %5 = arith.sitofp %4 : vector<2x16xi32> to vector<2x16xf32>
    %c0_1 = arith.constant 0 : index
    %c0_2 = arith.constant 0 : index
    %6 = vector.load %arg4[%c0_1, %c0_2] : memref<16x512xf32, #tpu.memory_space<vmem>>, vector<16x512xf32>
    %cst = arith.constant dense<0.000000e+00> : vector<2x512xf32>
    %7 = tpu.matmul %5, %6, %cst {dimension_numbers = #tpu.dot_dimension_numbers<[1], [0], [0], [1], [0, 0, 1, 1], [], []>} : vector<2x16xf32>, vector<16x512xf32>, vector<2x512xf32> -> vector<2x512xf32>
    %c0_3 = arith.constant 0 : index
    %c0_4 = arith.constant 0 : index
    %8 = vector.load %arg1[%c0_3, %c0_4] : memref<2x256xbf16, #tpu.memory_space<vmem>>, vector<2x256xbf16>
    %c0_5 = arith.constant 0 : index
    %c0_6 = arith.constant 0 : index
    %9 = vector.load %arg3[%c0_5, %c0_6] : memref<256x512xbf16, #tpu.memory_space<vmem>>, vector<256x512xbf16>
    %cst_7 = arith.constant dense<0.000000e+00> : vector<2x512xf32>
    %10 = tpu.matmul %8, %9, %cst_7 {dimension_numbers = #tpu.dot_dimension_numbers<[1], [0], [0], [1], [0, 0, 1, 1], [], []>} : vector<2x256xbf16>, vector<256x512xbf16>, vector<2x512xf32> -> vector<2x512xf32>
    %11 = arith.addf %10, %7 : vector<2x512xf32>
    %cst_8 = arith.constant 0.000000e+00 : f32
    %12 = vector.broadcast %cst_8 : f32 to vector<2x512xf32>
    %13 = arith.cmpf ogt, %11, %12 : vector<2x512xf32>
    %cst_9 = arith.constant 2.000000e-01 : f32
    %14 = vector.broadcast %cst_9 : f32 to vector<2x512xf32>
    %15 = arith.mulf %14, %11 : vector<2x512xf32>
    %16 = arith.select %13, %11, %15 : vector<2x512xi1>, vector<2x512xf32>
    %17 = arith.truncf %16 : vector<2x512xf32> to vector<2x512xbf16>
    %c0_10 = arith.constant 0 : index
    %c0_11 = arith.constant 0 : index
    %18 = vector.load %arg5[%c0_10, %c0_11] : memref<512x512xbf16, #tpu.memory_space<vmem>>, vector<512x512xbf16>
    %cst_12 = arith.constant dense<0.000000e+00> : vector<2x512xf32>
    %19 = tpu.matmul %17, %18, %cst_12 {dimension_numbers = #tpu.dot_dimension_numbers<[1], [0], [0], [1], [0, 0, 1, 1], [], []>} : vector<2x512xbf16>, vector<512x512xbf16>, vector<2x512xf32> -> vector<2x512xf32>
    %c0_13 = arith.constant 0 : index
    %c0_14 = arith.constant 0 : index
    %20 = vector.load %arg6[%c0_13, %c0_14] : memref<1x512xf32, #tpu.memory_space<vmem>>, vector<1x512xf32>
    %21 = vector.broadcast %20 : vector<1x512xf32> to vector<2x512xf32>
    %22 = arith.addf %19, %21 : vector<2x512xf32>
    %cst_15 = arith.constant 0.000000e+00 : f32
    %23 = vector.broadcast %cst_15 : f32 to vector<2x512xf32>
    %24 = arith.cmpf ogt, %22, %23 : vector<2x512xf32>
    %cst_16 = arith.constant 2.000000e-01 : f32
    %25 = vector.broadcast %cst_16 : f32 to vector<2x512xf32>
    %26 = arith.mulf %25, %22 : vector<2x512xf32>
    %27 = arith.select %24, %22, %26 : vector<2x512xi1>, vector<2x512xf32>
    %28 = arith.truncf %27 : vector<2x512xf32> to vector<2x512xbf16>
    %c0_17 = arith.constant 0 : index
    %c0_18 = arith.constant 0 : index
    %29 = vector.load %arg7[%c0_17, %c0_18] : memref<512x512xbf16, #tpu.memory_space<vmem>>, vector<512x512xbf16>
    %cst_19 = arith.constant dense<0.000000e+00> : vector<2x512xf32>
    %30 = tpu.matmul %28, %29, %cst_19 {dimension_numbers = #tpu.dot_dimension_numbers<[1], [0], [0], [1], [0, 0, 1, 1], [], []>} : vector<2x512xbf16>, vector<512x512xbf16>, vector<2x512xf32> -> vector<2x512xf32>
    %c0_20 = arith.constant 0 : index
    %c0_21 = arith.constant 0 : index
    %31 = vector.load %arg8[%c0_20, %c0_21] : memref<1x512xf32, #tpu.memory_space<vmem>>, vector<1x512xf32>
    %32 = vector.broadcast %31 : vector<1x512xf32> to vector<2x512xf32>
    %33 = arith.addf %30, %32 : vector<2x512xf32>
    %cst_22 = arith.constant 0.000000e+00 : f32
    %34 = vector.broadcast %cst_22 : f32 to vector<2x512xf32>
    %35 = arith.cmpf ogt, %33, %34 : vector<2x512xf32>
    %cst_23 = arith.constant 2.000000e-01 : f32
    %36 = vector.broadcast %cst_23 : f32 to vector<2x512xf32>
    %37 = arith.mulf %36, %33 : vector<2x512xf32>
    %38 = arith.select %35, %33, %37 : vector<2x512xi1>, vector<2x512xf32>
    %c0_24 = arith.constant 0 : index
    %c0_25 = arith.constant 0 : index
    %39 = vector.load %arg9[%c0_24, %c0_25] : memref<1x512xf32, #tpu.memory_space<vmem>>, vector<1x512xf32>
    %40 = vector.broadcast %39 : vector<1x512xf32> to vector<2x512xf32>
    %41 = arith.mulf %38, %40 : vector<2x512xf32>
    %cst_26 = arith.constant dense<0.000000e+00> : vector<2xf32>
    %42 = vector.multi_reduction <add>, %41, %cst_26 [1] : vector<2x512xf32> to vector<2xf32>
    %43 = vector.shape_cast %42 : vector<2xf32> to vector<2x1xf32>
    %c0_27 = arith.constant 0 : index
    %c0_28 = arith.constant 0 : index
    %44 = vector.load %arg10[%c0_27, %c0_28] : memref<1x1xf32, #tpu.memory_space<vmem>>, vector<1x1xf32>
    %45 = vector.broadcast %44 : vector<1x1xf32> to vector<2x1xf32>
    %46 = arith.addf %43, %45 : vector<2x1xf32>
    %c0_29 = arith.constant 0 : index
    %c0_30 = arith.constant 0 : index
    %47 = vector.load %arg11[%c0_29, %c0_30] : memref<2x1xf32, #tpu.memory_space<vmem>>, vector<2x1xf32>
    tpu.vector_store %arg11[%c0_29, %c0_30], %46 {strides = array<i32>} : memref<2x1xf32, #tpu.memory_space<vmem>>, vector<2x1xf32>,
    return
  }
  func.func @transform_0(%arg0: i32) -> (i32, i32) {
    %c0_i32 = arith.constant 0 : i32
    %c0_i32_0 = arith.constant 0 : i32
    return %arg0, %c0_i32 : i32, i32
  }
  func.func @transform_1(%arg0: i32) -> (i32, i32) {
    %c0_i32 = arith.constant 0 : i32
    %c0_i32_0 = arith.constant 0 : i32
    return %arg0, %c0_i32 : i32, i32
  }
  func.func @transform_2(%arg0: i32) -> (i32, i32) {
    %c0_i32 = arith.constant 0 : i32
    %c0_i32_0 = arith.constant 0 : i32
    %c0_i32_1 = arith.constant 0 : i32
    return %c0_i32, %c0_i32_0 : i32, i32
  }
  func.func @transform_3(%arg0: i32) -> (i32, i32) {
    %c0_i32 = arith.constant 0 : i32
    %c0_i32_0 = arith.constant 0 : i32
    %c0_i32_1 = arith.constant 0 : i32
    return %c0_i32, %c0_i32_0 : i32, i32
  }
  func.func @transform_4(%arg0: i32) -> (i32, i32) {
    %c0_i32 = arith.constant 0 : i32
    %c0_i32_0 = arith.constant 0 : i32
    %c0_i32_1 = arith.constant 0 : i32
    return %c0_i32, %c0_i32_0 : i32, i32
  }
  func.func @transform_5(%arg0: i32) -> (i32, i32) {
    %c0_i32 = arith.constant 0 : i32
    %c0_i32_0 = arith.constant 0 : i32
    %c0_i32_1 = arith.constant 0 : i32
    return %c0_i32, %c0_i32_0 : i32, i32
  }
  func.func @transform_6(%arg0: i32) -> (i32, i32) {
    %c0_i32 = arith.constant 0 : i32
    %c0_i32_0 = arith.constant 0 : i32
    %c0_i32_1 = arith.constant 0 : i32
    return %c0_i32, %c0_i32_0 : i32, i32
  }
  func.func @transform_7(%arg0: i32) -> (i32, i32) {
    %c0_i32 = arith.constant 0 : i32
    %c0_i32_0 = arith.constant 0 : i32
    %c0_i32_1 = arith.constant 0 : i32
    return %c0_i32, %c0_i32_0 : i32, i32
  }
  func.func @transform_8(%arg0: i32) -> (i32, i32) {
    %c0_i32 = arith.constant 0 : i32
    %c0_i32_0 = arith.constant 0 : i32
    %c0_i32_1 = arith.constant 0 : i32
    return %c0_i32, %c0_i32_0 : i32, i32
  }
  func.func @transform_9(%arg0: i32) -> (i32, i32) {
    %c0_i32 = arith.constant 0 : i32
    %c0_i32_0 = arith.constant 0 : i32
    %c0_i32_1 = arith.constant 0 : i32
    return %c0_i32, %c0_i32_0 : i32, i32
  }
  func.func @transform_10(%arg0: i32) -> (i32, i32) {
    %c0_i32 = arith.constant 0 : i32
    %c0_i32_0 = arith.constant 0 : i32
    return %arg0, %c0_i32 : i32, i32
  }
}

</mosaic_0001>

<bundles_post_ra>
// kernel: tpu_custom_call.1
= control target key start
LH: loop header
LB: loop body
LE: loop exit
PB: predicated region body
PF: predicated region fallthrough
CT: control target
= control target key end

     0   :  { %s3896_s0 = inlined_call_operand.vmem [shape: bf16[2,256], index: 0, kind: input, shape index: {}]   ;;  %s3897_s1 = inlined_call_operand.vmem [shape: s32[2,1], index: 1, kind: input, shape index: {}]   ;;  %s3898_s2 = inlined_call_operand.hbm [shape: bf16[256,512], index: 2, kind: input, shape index: {}]   ;;  %s3899_s3 = inlined_call_operand.hbm [shape: f32[16,512], index: 3, kind: input, shape index: {}]   ;;  %s3900_s4 = inlined_call_operand.hbm [shape: bf16[512,512], index: 4, kind: input, shape index: {}]   ;;  %s3901_s5 = inlined_call_operand.vmem [shape: f32[1,512], index: 5, kind: input, shape index: {}]   ;;  %s3902_s6 = inlined_call_operand.hbm [shape: bf16[512,512], index: 6, kind: input, shape index: {}]   ;;  %s3903_s7 = inlined_call_operand.vmem [shape: f32[1,512], index: 7, kind: input, shape index: {}]   ;;  %s3904_s8 = inlined_call_operand.vmem [shape: f32[1,512], index: 8, kind: input, shape index: {}]   ;;  %s3905_s9 = inlined_call_operand.<no memory space> [shape: f32[1,1], index: 9, kind: input, shape index: {}]   ;;  %s3906_s10 = inlined_call_operand.vmem [shape: f32[2,1], index: 10, kind: output, shape index: {}]  }
   0x1   :  { %v15_v0 = vstv %s3905_s9 }
   0x2   :  { %16 = vst [vmem:[#allocation2] sm:$0x1] %v15_v0 }
   0x3   :  { %17 = vsyncpa [#allocation4], 0 }
   0x4   :  { %18 = vsyncpa [#allocation6], 0 }
   0x5   :  { %19 = vsyncpa [#allocation9], 0  ;;  %s3695_s15 = smov [#allocation5]   ;;  %s3601_s19 = scalar_lea.hbm %s3899_s3, 1024 }
   0x6   :  { %s41_s16 = sshll.u32 %s3695_s15, 4  ;;  %p3602_p0 = scmp.ne.s32.totalorder %s3899_s3, %s3601_s19  ;;  %s42_s16 = int_to_ptr.vmem [resolvable:$true] %s41_s16 }
   0x7   :  { %p3605_p1 = scmp.lt.u32.totalorder %s3601_s19, %s3899_s3 }
   0x9   :  { %p3607_p2 = pnand %p3605_p1, %p3602_p0 }
   0xb   :  { %3610 = shalt.err (!%p3607_p2)
}
   0xc   :  { %s3611_s9 = scalar_lea.vmem %s42_s16, 1024  ;;  %p3616_p4 = scmp.lt.s32.totalorder %s42_s16, %s42_s16 }
   0xd   :  { %p3612_p3 = scmp.ne.s32.totalorder %s42_s16, %s3611_s9  ;;  %p3617_p5 = scmp.lt.s32.totalorder %s3611_s9, %s3611_s9 }
   0xf   :  { %p3618_p6 = por %p3617_p5, %p3616_p4 }
  0x11   :  { %p3619_p7 = pnand %p3618_p6, %p3612_p3 }
  0x13   :  { %3622 = shalt.err (!%p3619_p7)
}
  0x14   :  { %s3696_s24 = smov 512   ;;  %s3697_s25 = smov 32  }
  0x15   :  { %47 = dma.hbm_to_vmem [thread:$0]  %s3899_s3, 1024, %s42_s16, [#allocation6], %s3696_s24, %s3696_s24, %s3697_s25  }
  0x16   :  { %s3698_s28 = smov [#allocation3]   ;;  %s3623_s12 = scalar_lea.hbm %s3898_s2, 8192 }
  0x17   :  { %s29_s29 = sshll.u32 %s3698_s28, 4  ;;  %p3624_p8 = scmp.ne.s32.totalorder %s3898_s2, %s3623_s12  ;;  %s30_s29 = int_to_ptr.vmem [resolvable:$true] %s29_s29 }
  0x18   :  { %p3627_p9 = scmp.lt.u32.totalorder %s3623_s12, %s3898_s2 }
  0x1a   :  { %p3629_p10 = pnand %p3627_p9, %p3624_p8 }
  0x1c   :  { %3632 = shalt.err (!%p3629_p10)
}
  0x1d   :  { %s3633_s18 = scalar_lea.vmem %s30_s29, 8192  ;;  %p3638_p12 = scmp.lt.s32.totalorder %s30_s29, %s30_s29 }
  0x1e   :  { %p3634_p11 = scmp.ne.s32.totalorder %s30_s29, %s3633_s18  ;;  %p3639_p13 = scmp.lt.s32.totalorder %s3633_s18, %s3633_s18 }
  0x20   :  { %p3640_p0 = por %p3639_p13, %p3638_p12 }
  0x22   :  { %p3641_p1 = pnand %p3640_p0, %p3634_p11 }
  0x24   :  { %3644 = shalt.err (!%p3641_p1)
}
  0x25   :  { %s3699_s3 = smov 256   ;;  %s3700_s16 = smov 16  }
  0x26   :  { %35 = dma.hbm_to_vmem [thread:$0]  %s3898_s2, 8192, %s30_s29, [#allocation4], %s3699_s3, %s3699_s3, %s3700_s16  }
  0x27   :  { %s3701_s21 = smov [#allocation7]   ;;  %s3702_s23 = smov [#allocation8]  }
  0x28   :  { %s53_s22 = sshll.u32 %s3701_s21, 4  ;;  %s67_s9 = sshll.u32 %s3702_s23, 4  ;;  %s54_s22 = int_to_ptr.vmem [resolvable:$true] %s53_s22  ;;  %s3791_s9 = int_to_ptr.vmem [resolvable:$true] %s67_s9 }
  0x29   :  { %s3645_s26 = scalar_lea.hbm %s3900_s4, 16384 }
  0x2a   :  { %p3646_p2 = scmp.ne.s32.totalorder %s3900_s4, %s3645_s26  ;;  %p3649_p3 = scmp.lt.u32.totalorder %s3645_s26, %s3900_s4 }
  0x2c   :  { %p3651_p4 = pnand %p3649_p3, %p3646_p2 }
  0x2e   :  { %3654 = shalt.err (!%p3651_p4)
}
  0x2f   :  { %s3655_s2 = scalar_lea.vmem %s54_s22, 16384  ;;  %p3660_p6 = scmp.lt.s32.totalorder %s54_s22, %s54_s22 }
  0x30   :  { %p3656_p5 = scmp.ne.s32.totalorder %s54_s22, %s3655_s2  ;;  %p3661_p7 = scmp.lt.s32.totalorder %s3655_s2, %s3655_s2 }
  0x32   :  { %p3662_p8 = por %p3661_p7, %p3660_p6 }
  0x34   :  { %p3663_p9 = pnand %p3662_p8, %p3656_p5 }
  0x36   :  { %3666 = shalt.err (!%p3663_p9)
}
  0x37   :  { %59 = dma.hbm_to_vmem [thread:$0]  %s3900_s4, 16384, %s54_s22, [#allocation6], %s3699_s3, %s3699_s3, %s3700_s16  }
  0x38   :  { %s3667_s15 = scalar_lea.hbm %s3902_s6, 16384 }
  0x39   :  { %p3668_p10 = scmp.ne.s32.totalorder %s3902_s6, %s3667_s15  ;;  %p3671_p11 = scmp.lt.u32.totalorder %s3667_s15, %s3902_s6 }
  0x3b   :  { %p3673_p12 = pnand %p3671_p11, %p3668_p10 }
  0x3d   :  { %3676 = shalt.err (!%p3673_p12)
}
  0x3e   :  { %s3677_s21 = scalar_lea.vmem %s3791_s9, 16384  ;;  %p3682_p0 = scmp.lt.s32.totalorder %s3791_s9, %s3791_s9 }
  0x3f   :  { %p3678_p13 = scmp.ne.s32.totalorder %s3791_s9, %s3677_s21  ;;  %p3683_p1 = scmp.lt.s32.totalorder %s3677_s21, %s3677_s21 }
  0x41   :  { %p3684_p2 = por %p3683_p1, %p3682_p0 }
  0x43   :  { %p3685_p3 = pnand %p3684_p2, %p3678_p13 }
  0x45   :  { %3688 = shalt.err (!%p3685_p3)
}
  0x46   :  { %73 = dma.hbm_to_vmem [thread:$0]  %s3902_s6, 16384, %s3791_s9, [#allocation9], %s3699_s3, %s3699_s3, %s3700_s16  }
  0x47   :  { %3689 = dma.done.wait [#allocation4], 8192  }
  0x48   :  { %3690 = vsyncadd [#allocation4], 4294959104 }
  0x49   :  { %3691 = dma.done.wait [#allocation6], 17408  }
  0x4a   :  { %3692 = vsyncadd [#allocation6], 4294949888 }
  0x4b   :  { %3693 = dma.done.wait [#allocation9], 16384  }
  0x4c   :  { %3694 = vsyncadd [#allocation9], 4294950912  ;;  %v3703_v1 = vmov 0   ;;  %v3704_v2 = vmov 0.0   ;;  %v92_v3 = vld [vmem:[%s3897_s1] sm:$0x3]  ;;  %v93_v20 = vlaneseq }
  0x4d   :  { %3120 = vset.pattern.permute.xlu0 %v3703_v1  ;;  %177 = vmatprep.mubr.f32.mxu0 %v3704_v2  ;;  %v102_v4 = vld [vmem:[#allocation5 + $0x8] sm:$0xff]  ;;  %v104_v7 = vld [vmem:[#allocation5 + $0x18] sm:$0xff]  ;;  %v101_v9 = vld [vmem:[#allocation5] sm:$0xff]  ;;  %v3705_v18 = vmov 1966171168   ;;  %vm109_vm0 = vcmask 130048  }
  0x4e   :  { %248 = vmatprep.mubr.f32.mxu1 %v3704_v2  ;;  %v106_v5 = vld [vmem:[#allocation5 + $0x28] sm:$0xff]  ;;  %96 = vperm.xlu0 %3120, %v92_v3   ;;  %v108_v8 = vld [vmem:[#allocation5 + $0x38] sm:$0xff]  ;;  %v105_v11 = vld [vmem:[#allocation5 + $0x20] sm:$0xff]  ;;  %v330_v19 = vunpack.c.l.s4 %v3705_v18  ;;  %v3836_v22 = vshrl.u32 %v93_v20, 7  ;;  %v94_v24 = vand.u32 127, %v93_v20  ;;  %vm2725_vm14 = vcmask 1041408  }
  0x4f   :  { %v3077_v6 = vpack.c.bf16 %v106_v5, %v102_v4  ;;  %v3081_v10 = vpack.c.bf16 %v108_v8, %v104_v7  ;;  %v103_v12 = vld [vmem:[#allocation5 + $0x10] sm:$0xff]  ;;  %v3079_v14 = vpack.c.bf16 %v105_v11, %v101_v9  ;;  %v3126_v17 = vld [vmem:[#allocation3 + $0xc] ss:$16 sps:$4 sm:$0xff]   ;;  %v3124_v26 = vld [vmem:[#allocation3 + $0x8] ss:$16 sps:$4 sm:$0xff]   ;;  %vm2743_vm15 = vcmask 1024  }
  0x50   :  { %v107_v13 = vld [vmem:[#allocation5 + $0x30] sm:$0xff]  ;;  %v3834_v21 = vld.sshfl [vmem:[%s3896_s0] sm:$0x11 pattern:$0x75316420]  ;;  %v331_v23 = vunpack.c.0.s8 %v330_v19 }
  0x51   :  { %3078 = vmatprep.subr.bf16.mxu0 %v3077_v6  ;;  %v3083_v15 = vpack.c.bf16 %v107_v13, %v103_v12  ;;  %3082 = vmatprep.subr.bf16.mxu1 %v3081_v10  ;;  %v3123_v16 = vld [vmem:[#allocation3 + $0x4] ss:$16 sps:$4 sm:$0xff]   ;;  %v3121_v25 = vld [vmem:[#allocation3] ss:$16 sps:$4 sm:$0xff]   ;;  %v328_v27 = vcombine.high %v3834_v21, %v3834_v21  ;;  %v3132_v30 = vld [vmem:[#allocation3 + $0x2c] ss:$16 sps:$4 sm:$0xff]  }
  0x52   :  { %3080 = vmatpush1.bf16.msra.mxu0 %v3079_v14  ;;  %v3841_v28 = vsub.s32 %v331_v23, %v3836_v22  ;;  %v3129_v29 = vld [vmem:[#allocation3 + $0x24] ss:$16 sps:$4 sm:$0xff]   ;;  %v3127_v34 = vld [vmem:[#allocation3 + $0x20] ss:$16 sps:$4 sm:$0xff]   ;;  %v3130_v35 = vld [vmem:[#allocation3 + $0x28] ss:$16 sps:$4 sm:$0xff]  }
  0x53   :  { %3084 = vmatpush1.bf16.msra.mxu1 %v3083_v15  ;;  %665 = vmatprep.subr.bf16.mxu0 %v3123_v16  ;;  %v3135_v36 = vld [vmem:[#allocation3 + $0x44] ss:$16 sps:$4 sm:$0xff]   ;;  %v3138_v37 = vld [vmem:[#allocation3 + $0x4c] ss:$16 sps:$4 sm:$0xff]   ;;  %v3133_v38 = vld [vmem:[#allocation3 + $0x40] ss:$16 sps:$4 sm:$0xff]  }
  0x54   :  { %706 = vmatprep.subr.bf16.mxu1 %v3126_v17  ;;  %v342_v33 = vrot.slane %v328_v27, %v3841_v28  ;;  %v3136_v39 = vld [vmem:[#allocation3 + $0x48] ss:$16 sps:$4 sm:$0xff]   ;;  %v3141_v40 = vld [vmem:[#allocation3 + $0x64] ss:$16 sps:$4 sm:$0xff]   ;;  %v3144_v41 = vld [vmem:[#allocation3 + $0x6c] ss:$16 sps:$4 sm:$0xff]  }
  0x55   :  { %v3139_v42 = vld [vmem:[#allocation3 + $0x60] ss:$16 sps:$4 sm:$0xff]   ;;  %v3142_v43 = vld [vmem:[#allocation3 + $0x68] ss:$16 sps:$4 sm:$0xff]   ;;  %v3147_v44 = vld [vmem:[#allocation3 + $0x84] ss:$16 sps:$4 sm:$0xff]  }
  0x56   :  { %v3150_v45 = vld [vmem:[#allocation3 + $0x8c] ss:$16 sps:$4 sm:$0xff]   ;;  %v3145_v46 = vld [vmem:[#allocation3 + $0x80] ss:$16 sps:$4 sm:$0xff]   ;;  %v3148_v47 = vld [vmem:[#allocation3 + $0x88] ss:$16 sps:$4 sm:$0xff]  }
  0x57   :  { %v3153_v48 = vld [vmem:[#allocation3 + $0xa4] ss:$16 sps:$4 sm:$0xff]   ;;  %v3156_v49 = vld [vmem:[#allocation3 + $0xac] ss:$16 sps:$4 sm:$0xff]   ;;  %v3151_v50 = vld [vmem:[#allocation3 + $0xa0] ss:$16 sps:$4 sm:$0xff]  }
  0x58   :  { %v3154_v51 = vld [vmem:[#allocation3 + $0xa8] ss:$16 sps:$4 sm:$0xff]   ;;  %v3159_v52 = vld [vmem:[#allocation3 + $0xc4] ss:$16 sps:$4 sm:$0xff]   ;;  %v3162_v53 = vld [vmem:[#allocation3 + $0xcc] ss:$16 sps:$4 sm:$0xff]  }
  0x59   :  { %v3157_v54 = vld [vmem:[#allocation3 + $0xc0] ss:$16 sps:$4 sm:$0xff]   ;;  %v3160_v55 = vld [vmem:[#allocation3 + $0xc8] ss:$16 sps:$4 sm:$0xff]   ;;  %v3165_v56 = vld [vmem:[#allocation3 + $0xe4] ss:$16 sps:$4 sm:$0xff]  }
  0x5a   :  { %v3168_v57 = vld [vmem:[#allocation3 + $0xec] ss:$16 sps:$4 sm:$0xff]   ;;  %v3163_v58 = vld [vmem:[#allocation3 + $0xe0] ss:$16 sps:$4 sm:$0xff]   ;;  %v3166_v59 = vld [vmem:[#allocation3 + $0xe8] ss:$16 sps:$4 sm:$0xff]  }
  0x5b   :  { %v3171_v60 = vld [vmem:[#allocation3 + $0x104] ss:$16 sps:$4 sm:$0xff]   ;;  %v3174_v61 = vld [vmem:[#allocation3 + $0x10c] ss:$16 sps:$4 sm:$0xff]   ;;  %v3169_v62 = vld [vmem:[#allocation3 + $0x100] ss:$16 sps:$4 sm:$0xff]  }
  0x5c   :  { %v3172_v63 = vld [vmem:[#allocation3 + $0x108] ss:$16 sps:$4 sm:$0xff]   ;;  %v3177_v0 = vld [vmem:[#allocation3 + $0x124] ss:$16 sps:$4 sm:$0xff]   ;;  %v3180_v1 = vld [vmem:[#allocation3 + $0x12c] ss:$16 sps:$4 sm:$0xff]  }
  0x5d   :  { %v3178_v3 = vld [vmem:[#allocation3 + $0x128] ss:$16 sps:$4 sm:$0xff]   ;;  %v3183_v4 = vld [vmem:[#allocation3 + $0x144] ss:$16 sps:$4 sm:$0xff]   ;;  %v3186_v5 = vld [vmem:[#allocation3 + $0x14c] ss:$16 sps:$4 sm:$0xff]  }
  0x5e   :  { %v3181_v6 = vld [vmem:[#allocation3 + $0x140] ss:$16 sps:$4 sm:$0xff]   ;;  %v3184_v7 = vld [vmem:[#allocation3 + $0x148] ss:$16 sps:$4 sm:$0xff]   ;;  %v3189_v8 = vld [vmem:[#allocation3 + $0x164] ss:$16 sps:$4 sm:$0xff]  }
  0x5f   :  { %v3192_v9 = vld [vmem:[#allocation3 + $0x16c] ss:$16 sps:$4 sm:$0xff]   ;;  %v3187_v10 = vld [vmem:[#allocation3 + $0x160] ss:$16 sps:$4 sm:$0xff]   ;;  %v3190_v11 = vld [vmem:[#allocation3 + $0x168] ss:$16 sps:$4 sm:$0xff]  }
  0x60   :  { %v3195_v12 = vld [vmem:[#allocation3 + $0x184] ss:$16 sps:$4 sm:$0xff]   ;;  %v3198_v13 = vld [vmem:[#allocation3 + $0x18c] ss:$16 sps:$4 sm:$0xff]   ;;  %v3193_v14 = vld [vmem:[#allocation3 + $0x180] ss:$16 sps:$4 sm:$0xff]  }
  0x61   :  { %v3196_v15 = vld [vmem:[#allocation3 + $0x188] ss:$16 sps:$4 sm:$0xff]   ;;  %v3201_v16 = vld [vmem:[#allocation3 + $0x1a4] ss:$16 sps:$4 sm:$0xff]   ;;  %v3204_v17 = vld [vmem:[#allocation3 + $0x1ac] ss:$16 sps:$4 sm:$0xff]  }
  0x62   :  { %v3199_v18 = vld [vmem:[#allocation3 + $0x1a0] ss:$16 sps:$4 sm:$0xff]   ;;  %v3202_v19 = vld [vmem:[#allocation3 + $0x1a8] ss:$16 sps:$4 sm:$0xff]   ;;  %v3207_v20 = vld [vmem:[#allocation3 + $0x1c4] ss:$16 sps:$4 sm:$0xff]  }
  0x63   :  { %v3210_v23 = vld [vmem:[#allocation3 + $0x1cc] ss:$16 sps:$4 sm:$0xff]  }
  0x64   :  { %v3216_v27 = vld [vmem:[#allocation3 + $0x1ec] ss:$16 sps:$4 sm:$0xff]  }
  0xcd   :  { %v97_v31 = vpop.permute.xlu0 %96 }
  0xce   :  { %vm98_vm1 = vcmp.eq.s32.totalorder %v97_v31, %v94_v24  ;;  %v3205_v24 = vld [vmem:[#allocation3 + $0x1c0] ss:$16 sps:$4 sm:$0xff]   ;;  %v335_v31 = vrot.slane %v3834_v21, %v3841_v28  ;;  %v3234_v21 = vld [vmem:[#allocation7 + $0x4c] ss:$16 sps:$4 sm:$0xff]  }
  0xcf   :  { %v2752_v32 = vsel %vm98_vm1, 1.0, %v3704_v2  ;;  %v3175_v2 = vld [vmem:[#allocation3 + $0x120] ss:$16 sps:$4 sm:$0xff]  }
  0xd0   :  { %2753 = vmatmul.mubr.msk.f32.vlgmr.msra.gmra.mrb[0].mxu0 %vm109_vm0, %v2752_v32  ;;  %2754 = vmatmul.mubr.msk.f32.vlgmr.msra.gmra.mrb[0].mxu1 %vm109_vm0, %v2752_v32  ;;  %v3217_v32 = vld [vmem:[#allocation7] ss:$16 sps:$4 sm:$0xff]  }
  0xd1   :  { %666 = vmatpush1.bf16.msra.mxu0 %v3121_v25  ;;  %707 = vmatpush1.bf16.msra.mxu1 %v3124_v26  ;;  %v3208_v25 = vld [vmem:[#allocation3 + $0x1c8] ss:$16 sps:$4 sm:$0xff]   ;;  %v3213_v26 = vld [vmem:[#allocation3 + $0x1e4] ss:$16 sps:$4 sm:$0xff]   ;;  %v3229_v28 = vld [vmem:[#allocation7 + $0x40] ss:$16 sps:$4 sm:$0xff]  }
  0xd2   :  { %667 = vmatprep.subr.bf16.mxu0 %v3129_v29  ;;  %708 = vmatprep.subr.bf16.mxu1 %v3132_v30  ;;  %v3211_v29 = vld [vmem:[#allocation3 + $0x1e0] ss:$16 sps:$4 sm:$0xff]   ;;  %v3214_v30 = vld [vmem:[#allocation3 + $0x1e8] ss:$16 sps:$4 sm:$0xff]  }
  0xd3   :  { %697 = vmatprep.mubr.bf16.mxu0 %v342_v33  ;;  %738 = vmatprep.mubr.bf16.mxu1 %v342_v33  ;;  %v3219_v33 = vld [vmem:[#allocation7 + $0x4] ss:$16 sps:$4 sm:$0xff]  }
  0xd5   :  { %668 = vmatpush1.bf16.msra.mxu0 %v3127_v34  ;;  %709 = vmatpush1.bf16.msra.mxu1 %v3130_v35  ;;  %v3220_v34 = vld [vmem:[#allocation7 + $0x8] ss:$16 sps:$4 sm:$0xff]   ;;  %v3222_v35 = vld [vmem:[#allocation7 + $0xc] ss:$16 sps:$4 sm:$0xff]  }
  0xd6   :  { %669 = vmatprep.subr.bf16.mxu0 %v3135_v36  ;;  %710 = vmatprep.subr.bf16.mxu1 %v3138_v37  ;;  %v3225_v36 = vld [vmem:[#allocation7 + $0x24] ss:$16 sps:$4 sm:$0xff]   ;;  %v3228_v37 = vld [vmem:[#allocation7 + $0x2c] ss:$16 sps:$4 sm:$0xff]  }
  0xd9   :  { %670 = vmatpush1.bf16.msra.mxu0 %v3133_v38  ;;  %711 = vmatpush1.bf16.msra.mxu1 %v3136_v39  ;;  %v3223_v38 = vld [vmem:[#allocation7 + $0x20] ss:$16 sps:$4 sm:$0xff]   ;;  %v3226_v39 = vld [vmem:[#allocation7 + $0x28] ss:$16 sps:$4 sm:$0xff]  }
  0xda   :  { %671 = vmatprep.subr.bf16.mxu0 %v3141_v40  ;;  %712 = vmatprep.subr.bf16.mxu1 %v3144_v41  ;;  %v3231_v40 = vld [vmem:[#allocation7 + $0x44] ss:$16 sps:$4 sm:$0xff]   ;;  %v3232_v41 = vld [vmem:[#allocation7 + $0x48] ss:$16 sps:$4 sm:$0xff]  }
  0xdd   :  { %672 = vmatpush1.bf16.msra.mxu0 %v3139_v42  ;;  %713 = vmatpush1.bf16.msra.mxu1 %v3142_v43  ;;  %v3237_v42 = vld [vmem:[#allocation7 + $0x64] ss:$16 sps:$4 sm:$0xff]   ;;  %v3240_v43 = vld [vmem:[#allocation7 + $0x6c] ss:$16 sps:$4 sm:$0xff]  }
  0xde   :  { %673 = vmatprep.subr.bf16.mxu0 %v3147_v44  ;;  %714 = vmatprep.subr.bf16.mxu1 %v3150_v45  ;;  %v3235_v44 = vld [vmem:[#allocation7 + $0x60] ss:$16 sps:$4 sm:$0xff]   ;;  %v3238_v45 = vld [vmem:[#allocation7 + $0x68] ss:$16 sps:$4 sm:$0xff]  }
  0xe1   :  { %674 = vmatpush1.bf16.msra.mxu0 %v3145_v46  ;;  %715 = vmatpush1.bf16.msra.mxu1 %v3148_v47  ;;  %v3243_v46 = vld [vmem:[#allocation7 + $0x84] ss:$16 sps:$4 sm:$0xff]   ;;  %v3246_v47 = vld [vmem:[#allocation7 + $0x8c] ss:$16 sps:$4 sm:$0xff]  }
  0xe2   :  { %675 = vmatprep.subr.bf16.mxu0 %v3153_v48  ;;  %716 = vmatprep.subr.bf16.mxu1 %v3156_v49  ;;  %v3241_v48 = vld [vmem:[#allocation7 + $0x80] ss:$16 sps:$4 sm:$0xff]   ;;  %v3244_v49 = vld [vmem:[#allocation7 + $0x88] ss:$16 sps:$4 sm:$0xff]  }
  0xe5   :  { %676 = vmatpush1.bf16.msra.mxu0 %v3151_v50  ;;  %717 = vmatpush1.bf16.msra.mxu1 %v3154_v51  ;;  %v3249_v50 = vld [vmem:[#allocation7 + $0xa4] ss:$16 sps:$4 sm:$0xff]   ;;  %v3252_v51 = vld [vmem:[#allocation7 + $0xac] ss:$16 sps:$4 sm:$0xff]  }
  0xe6   :  { %677 = vmatprep.subr.bf16.mxu0 %v3159_v52  ;;  %718 = vmatprep.subr.bf16.mxu1 %v3162_v53  ;;  %v3247_v52 = vld [vmem:[#allocation7 + $0xa0] ss:$16 sps:$4 sm:$0xff]   ;;  %v3250_v53 = vld [vmem:[#allocation7 + $0xa8] ss:$16 sps:$4 sm:$0xff]  }
  0xe9   :  { %678 = vmatpush1.bf16.msra.mxu0 %v3157_v54  ;;  %719 = vmatpush1.bf16.msra.mxu1 %v3160_v55  ;;  %v3255_v54 = vld [vmem:[#allocation7 + $0xc4] ss:$16 sps:$4 sm:$0xff]   ;;  %v3258_v55 = vld [vmem:[#allocation7 + $0xcc] ss:$16 sps:$4 sm:$0xff]  }
  0xea   :  { %679 = vmatprep.subr.bf16.mxu0 %v3165_v56  ;;  %720 = vmatprep.subr.bf16.mxu1 %v3168_v57  ;;  %v3253_v56 = vld [vmem:[#allocation7 + $0xc0] ss:$16 sps:$4 sm:$0xff]   ;;  %v3256_v57 = vld [vmem:[#allocation7 + $0xc8] ss:$16 sps:$4 sm:$0xff]  }
  0xed   :  { %680 = vmatpush1.bf16.msra.mxu0 %v3163_v58  ;;  %721 = vmatpush1.bf16.msra.mxu1 %v3166_v59  ;;  %v3261_v58 = vld [vmem:[#allocation7 + $0xe4] ss:$16 sps:$4 sm:$0xff]   ;;  %v3264_v59 = vld [vmem:[#allocation7 + $0xec] ss:$16 sps:$4 sm:$0xff]  }
  0xee   :  { %681 = vmatprep.subr.bf16.mxu0 %v3171_v60  ;;  %722 = vmatprep.subr.bf16.mxu1 %v3174_v61  ;;  %v3259_v60 = vld [vmem:[#allocation7 + $0xe0] ss:$16 sps:$4 sm:$0xff]   ;;  %v3262_v61 = vld [vmem:[#allocation7 + $0xe8] ss:$16 sps:$4 sm:$0xff]  }
  0xf1   :  { %682 = vmatpush1.bf16.msra.mxu0 %v3169_v62  ;;  %723 = vmatpush1.bf16.msra.mxu1 %v3172_v63  ;;  %v3267_v62 = vld [vmem:[#allocation7 + $0x104] ss:$16 sps:$4 sm:$0xff]   ;;  %v3270_v63 = vld [vmem:[#allocation7 + $0x10c] ss:$16 sps:$4 sm:$0xff]  }
  0xf2   :  { %683 = vmatprep.subr.bf16.mxu0 %v3177_v0  ;;  %724 = vmatprep.subr.bf16.mxu1 %v3180_v1  ;;  %v3265_v0 = vld [vmem:[#allocation7 + $0x100] ss:$16 sps:$4 sm:$0xff]   ;;  %v3268_v1 = vld [vmem:[#allocation7 + $0x108] ss:$16 sps:$4 sm:$0xff]  }
  0xf5   :  { %684 = vmatpush1.bf16.msra.mxu0 %v3175_v2  ;;  %725 = vmatpush1.bf16.msra.mxu1 %v3178_v3  ;;  %v3273_v2 = vld [vmem:[#allocation7 + $0x124] ss:$16 sps:$4 sm:$0xff]   ;;  %v3276_v3 = vld [vmem:[#allocation7 + $0x12c] ss:$16 sps:$4 sm:$0xff]  }
  0xf6   :  { %685 = vmatprep.subr.bf16.mxu0 %v3183_v4  ;;  %726 = vmatprep.subr.bf16.mxu1 %v3186_v5  ;;  %v3271_v4 = vld [vmem:[#allocation7 + $0x120] ss:$16 sps:$4 sm:$0xff]   ;;  %v3274_v5 = vld [vmem:[#allocation7 + $0x128] ss:$16 sps:$4 sm:$0xff]  }
  0xf9   :  { %686 = vmatpush1.bf16.msra.mxu0 %v3181_v6  ;;  %727 = vmatpush1.bf16.msra.mxu1 %v3184_v7  ;;  %v3279_v6 = vld [vmem:[#allocation7 + $0x144] ss:$16 sps:$4 sm:$0xff]   ;;  %v3282_v7 = vld [vmem:[#allocation7 + $0x14c] ss:$16 sps:$4 sm:$0xff]  }
  0xfa   :  { %687 = vmatprep.subr.bf16.mxu0 %v3189_v8  ;;  %728 = vmatprep.subr.bf16.mxu1 %v3192_v9  ;;  %v3277_v8 = vld [vmem:[#allocation7 + $0x140] ss:$16 sps:$4 sm:$0xff]   ;;  %v3280_v9 = vld [vmem:[#allocation7 + $0x148] ss:$16 sps:$4 sm:$0xff]  }
  0xfd   :  { %688 = vmatpush1.bf16.msra.mxu0 %v3187_v10  ;;  %729 = vmatpush1.bf16.msra.mxu1 %v3190_v11  ;;  %v3285_v10 = vld [vmem:[#allocation7 + $0x164] ss:$16 sps:$4 sm:$0xff]   ;;  %v3288_v11 = vld [vmem:[#allocation7 + $0x16c] ss:$16 sps:$4 sm:$0xff]  }
  0xfe   :  { %689 = vmatprep.subr.bf16.mxu0 %v3195_v12  ;;  %730 = vmatprep.subr.bf16.mxu1 %v3198_v13  ;;  %v3283_v12 = vld [vmem:[#allocation7 + $0x160] ss:$16 sps:$4 sm:$0xff]   ;;  %v3286_v13 = vld [vmem:[#allocation7 + $0x168] ss:$16 sps:$4 sm:$0xff]  }
 0x101   :  { %690 = vmatpush1.bf16.msra.mxu0 %v3193_v14  ;;  %731 = vmatpush1.bf16.msra.mxu1 %v3196_v15  ;;  %v3291_v14 = vld [vmem:[#allocation7 + $0x184] ss:$16 sps:$4 sm:$0xff]   ;;  %v3294_v15 = vld [vmem:[#allocation7 + $0x18c] ss:$16 sps:$4 sm:$0xff]  }
 0x102   :  { %691 = vmatprep.subr.bf16.mxu0 %v3201_v16  ;;  %732 = vmatprep.subr.bf16.mxu1 %v3204_v17  ;;  %v3289_v16 = vld [vmem:[#allocation7 + $0x180] ss:$16 sps:$4 sm:$0xff]   ;;  %v3292_v17 = vld [vmem:[#allocation7 + $0x188] ss:$16 sps:$4 sm:$0xff]  }
 0x105   :  { %692 = vmatpush1.bf16.msra.mxu0 %v3199_v18  ;;  %733 = vmatpush1.bf16.msra.mxu1 %v3202_v19  ;;  %v3297_v18 = vld [vmem:[#allocation7 + $0x1a4] ss:$16 sps:$4 sm:$0xff]   ;;  %v3300_v19 = vld [vmem:[#allocation7 + $0x1ac] ss:$16 sps:$4 sm:$0xff]  }
 0x106   :  { %693 = vmatprep.subr.bf16.mxu0 %v3207_v20  ;;  %734 = vmatprep.subr.bf16.mxu1 %v3210_v23  ;;  %v3295_v20 = vld [vmem:[#allocation7 + $0x1a0] ss:$16 sps:$4 sm:$0xff]   ;;  %v3298_v23 = vld [vmem:[#allocation7 + $0x1a8] ss:$16 sps:$4 sm:$0xff]  }
 0x109   :  { %694 = vmatpush1.bf16.msra.mxu0 %v3205_v24  ;;  %735 = vmatpush1.bf16.msra.mxu1 %v3208_v25  ;;  %v3303_v24 = vld [vmem:[#allocation7 + $0x1c4] ss:$16 sps:$4 sm:$0xff]   ;;  %v3306_v25 = vld [vmem:[#allocation7 + $0x1cc] ss:$16 sps:$4 sm:$0xff]  }
 0x10a   :  { %695 = vmatprep.subr.bf16.mxu0 %v3213_v26  ;;  %736 = vmatprep.subr.bf16.mxu1 %v3216_v27  ;;  %v3301_v26 = vld [vmem:[#allocation7 + $0x1c0] ss:$16 sps:$4 sm:$0xff]   ;;  %v3304_v27 = vld [vmem:[#allocation7 + $0x1c8] ss:$16 sps:$4 sm:$0xff]  }
 0x10d   :  { %696 = vmatpush1.bf16.msra.mxu0 %v3211_v29  ;;  %737 = vmatpush1.bf16.msra.mxu1 %v3214_v30  ;;  %v3309_v29 = vld [vmem:[#allocation7 + $0x1e4] ss:$16 sps:$4 sm:$0xff]   ;;  %v3312_v30 = vld [vmem:[#allocation7 + $0x1ec] ss:$16 sps:$4 sm:$0xff]  }
 0x10e   :  { %1553 = vmatprep.subr.bf16.mxu0 %v3219_v33  ;;  %1635 = vmatprep.subr.bf16.mxu1 %v3222_v35  ;;  %v3315_v33 = vld [vmem:[#allocation7 + $0x204] ss:$16 sps:$4 sm:$0xff]  }
 0x110   :  { %698 = vmatmul.mubr.bf16.vlgmr.msra.gmra.mrb[4].mxu0 %v335_v31  ;;  %739 = vmatmul.mubr.bf16.vlgmr.msra.gmra.mrb[4].mxu1 %v335_v31  ;;  %v3307_v31 = vld [vmem:[#allocation7 + $0x1e0] ss:$16 sps:$4 sm:$0xff]  }
 0x111   :  { %1554 = vmatpush1.bf16.msra.mxu0 %v3217_v32  ;;  %1636 = vmatpush1.bf16.msra.mxu1 %v3220_v34  ;;  %v3310_v32 = vld [vmem:[#allocation7 + $0x1e8] ss:$16 sps:$4 sm:$0xff]   ;;  %v3318_v34 = vld [vmem:[#allocation7 + $0x20c] ss:$16 sps:$4 sm:$0xff]  }
 0x112   :  { %1555 = vmatprep.subr.bf16.mxu0 %v3225_v36  ;;  %1637 = vmatprep.subr.bf16.mxu1 %v3228_v37 }
 0x115   :  { %1556 = vmatpush1.bf16.msra.mxu0 %v3223_v38  ;;  %1638 = vmatpush1.bf16.msra.mxu1 %v3226_v39 }
 0x116   :  { %1557 = vmatprep.subr.bf16.mxu0 %v3231_v40  ;;  %1639 = vmatprep.subr.bf16.mxu1 %v3234_v21 }
 0x119   :  { %1558 = vmatpush1.bf16.msra.mxu0 %v3229_v28  ;;  %1640 = vmatpush1.bf16.msra.mxu1 %v3232_v41 }
 0x11a   :  { %1559 = vmatprep.subr.bf16.mxu0 %v3237_v42  ;;  %1641 = vmatprep.subr.bf16.mxu1 %v3240_v43 }
 0x11d   :  { %1560 = vmatpush1.bf16.msra.mxu0 %v3235_v44  ;;  %1642 = vmatpush1.bf16.msra.mxu1 %v3238_v45 }
 0x11e   :  { %1561 = vmatprep.subr.bf16.mxu0 %v3243_v46  ;;  %1643 = vmatprep.subr.bf16.mxu1 %v3246_v47 }
 0x121   :  { %1562 = vmatpush1.bf16.msra.mxu0 %v3241_v48  ;;  %1644 = vmatpush1.bf16.msra.mxu1 %v3244_v49 }
 0x122   :  { %1563 = vmatprep.subr.bf16.mxu0 %v3249_v50  ;;  %1645 = vmatprep.subr.bf16.mxu1 %v3252_v51 }
 0x125   :  { %1564 = vmatpush1.bf16.msra.mxu0 %v3247_v52  ;;  %1646 = vmatpush1.bf16.msra.mxu1 %v3250_v53 }
 0x126   :  { %1565 = vmatprep.subr.bf16.mxu0 %v3255_v54  ;;  %1647 = vmatprep.subr.bf16.mxu1 %v3258_v55  ;;  %v3313_v55 = vld [vmem:[#allocation7 + $0x200] ss:$16 sps:$4 sm:$0xff]  }
 0x129   :  { %1566 = vmatpush1.bf16.msra.mxu0 %v3253_v56  ;;  %1648 = vmatpush1.bf16.msra.mxu1 %v3256_v57  ;;  %v3316_v56 = vld [vmem:[#allocation7 + $0x208] ss:$16 sps:$4 sm:$0xff]  }
 0x12a   :  { %1567 = vmatprep.subr.bf16.mxu0 %v3261_v58  ;;  %1649 = vmatprep.subr.bf16.mxu1 %v3264_v59  ;;  %v3321_v59 = vld [vmem:[#allocation7 + $0x224] ss:$16 sps:$4 sm:$0xff]  }
 0x12d   :  { %1568 = vmatpush1.bf16.msra.mxu0 %v3259_v60  ;;  %1650 = vmatpush1.bf16.msra.mxu1 %v3262_v61  ;;  %v3324_v60 = vld [vmem:[#allocation7 + $0x22c] ss:$16 sps:$4 sm:$0xff]  }
 0x12e   :  { %1569 = vmatprep.subr.bf16.mxu0 %v3267_v62  ;;  %1651 = vmatprep.subr.bf16.mxu1 %v3270_v63  ;;  %v3319_v62 = vld [vmem:[#allocation7 + $0x220] ss:$16 sps:$4 sm:$0xff]   ;;  %v3322_v63 = vld [vmem:[#allocation7 + $0x228] ss:$16 sps:$4 sm:$0xff]  }
 0x131   :  { %1570 = vmatpush1.bf16.msra.mxu0 %v3265_v0  ;;  %1652 = vmatpush1.bf16.msra.mxu1 %v3268_v1  ;;  %v3327_v0 = vld [vmem:[#allocation7 + $0x244] ss:$16 sps:$4 sm:$0xff]   ;;  %v3330_v1 = vld [vmem:[#allocation7 + $0x24c] ss:$16 sps:$4 sm:$0xff]  }
 0x132   :  { %1571 = vmatprep.subr.bf16.mxu0 %v3273_v2  ;;  %1653 = vmatprep.subr.bf16.mxu1 %v3276_v3  ;;  %v3325_v2 = vld [vmem:[#allocation7 + $0x240] ss:$16 sps:$4 sm:$0xff]   ;;  %v3328_v3 = vld [vmem:[#allocation7 + $0x248] ss:$16 sps:$4 sm:$0xff]  }
 0x135   :  { %1572 = vmatpush1.bf16.msra.mxu0 %v3271_v4  ;;  %1654 = vmatpush1.bf16.msra.mxu1 %v3274_v5  ;;  %v3333_v4 = vld [vmem:[#allocation7 + $0x264] ss:$16 sps:$4 sm:$0xff]   ;;  %v3336_v5 = vld [vmem:[#allocation7 + $0x26c] ss:$16 sps:$4 sm:$0xff]  }
 0x136   :  { %1573 = vmatprep.subr.bf16.mxu0 %v3279_v6  ;;  %1655 = vmatprep.subr.bf16.mxu1 %v3282_v7  ;;  %v3331_v6 = vld [vmem:[#allocation7 + $0x260] ss:$16 sps:$4 sm:$0xff]   ;;  %v3334_v7 = vld [vmem:[#allocation7 + $0x268] ss:$16 sps:$4 sm:$0xff]  }
 0x139   :  { %1574 = vmatpush1.bf16.msra.mxu0 %v3277_v8  ;;  %1656 = vmatpush1.bf16.msra.mxu1 %v3280_v9  ;;  %v3339_v8 = vld [vmem:[#allocation7 + $0x284] ss:$16 sps:$4 sm:$0xff]   ;;  %v3342_v9 = vld [vmem:[#allocation7 + $0x28c] ss:$16 sps:$4 sm:$0xff]  }
 0x13a   :  { %1575 = vmatprep.subr.bf16.mxu0 %v3285_v10  ;;  %1657 = vmatprep.subr.bf16.mxu1 %v3288_v11  ;;  %v3337_v10 = vld [vmem:[#allocation7 + $0x280] ss:$16 sps:$4 sm:$0xff]   ;;  %v3340_v11 = vld [vmem:[#allocation7 + $0x288] ss:$16 sps:$4 sm:$0xff]  }
 0x13d   :  { %1576 = vmatpush1.bf16.msra.mxu0 %v3283_v12  ;;  %1658 = vmatpush1.bf16.msra.mxu1 %v3286_v13  ;;  %v3345_v12 = vld [vmem:[#allocation7 + $0x2a4] ss:$16 sps:$4 sm:$0xff]   ;;  %v3348_v13 = vld [vmem:[#allocation7 + $0x2ac] ss:$16 sps:$4 sm:$0xff]  }
 0x13e   :  { %1577 = vmatprep.subr.bf16.mxu0 %v3291_v14  ;;  %1659 = vmatprep.subr.bf16.mxu1 %v3294_v15  ;;  %v3343_v14 = vld [vmem:[#allocation7 + $0x2a0] ss:$16 sps:$4 sm:$0xff]   ;;  %v3346_v15 = vld [vmem:[#allocation7 + $0x2a8] ss:$16 sps:$4 sm:$0xff]  }
 0x141   :  { %1578 = vmatpush1.bf16.msra.mxu0 %v3289_v16  ;;  %1660 = vmatpush1.bf16.msra.mxu1 %v3292_v17  ;;  %v3351_v16 = vld [vmem:[#allocation7 + $0x2c4] ss:$16 sps:$4 sm:$0xff]   ;;  %v3354_v17 = vld [vmem:[#allocation7 + $0x2cc] ss:$16 sps:$4 sm:$0xff]  }
 0x142   :  { %1579 = vmatprep.subr.bf16.mxu0 %v3297_v18  ;;  %1661 = vmatprep.subr.bf16.mxu1 %v3300_v19  ;;  %v3349_v18 = vld [vmem:[#allocation7 + $0x2c0] ss:$16 sps:$4 sm:$0xff]   ;;  %v3352_v19 = vld [vmem:[#allocation7 + $0x2c8] ss:$16 sps:$4 sm:$0xff]  }
 0x145   :  { %1580 = vmatpush1.bf16.msra.mxu0 %v3295_v20  ;;  %1662 = vmatpush1.bf16.msra.mxu1 %v3298_v23  ;;  %v3357_v20 = vld [vmem:[#allocation7 + $0x2e4] ss:$16 sps:$4 sm:$0xff]   ;;  %v3360_v23 = vld [vmem:[#allocation7 + $0x2ec] ss:$16 sps:$4 sm:$0xff]  }
 0x146   :  { %1581 = vmatprep.subr.bf16.mxu0 %v3303_v24  ;;  %1663 = vmatprep.subr.bf16.mxu1 %v3306_v25  ;;  %v3355_v24 = vld [vmem:[#allocation7 + $0x2e0] ss:$16 sps:$4 sm:$0xff]   ;;  %v3358_v25 = vld [vmem:[#allocation7 + $0x2e8] ss:$16 sps:$4 sm:$0xff]  }
 0x149   :  { %1582 = vmatpush1.bf16.msra.mxu0 %v3301_v26  ;;  %1664 = vmatpush1.bf16.msra.mxu1 %v3304_v27  ;;  %v3363_v26 = vld [vmem:[#allocation7 + $0x304] ss:$16 sps:$4 sm:$0xff]   ;;  %v3366_v27 = vld [vmem:[#allocation7 + $0x30c] ss:$16 sps:$4 sm:$0xff]  }
 0x14a   :  { %1583 = vmatprep.subr.bf16.mxu0 %v3309_v29  ;;  %1665 = vmatprep.subr.bf16.mxu1 %v3312_v30  ;;  %v3361_v29 = vld [vmem:[#allocation7 + $0x300] ss:$16 sps:$4 sm:$0xff]   ;;  %v3364_v30 = vld [vmem:[#allocation7 + $0x308] ss:$16 sps:$4 sm:$0xff]  }
 0x14d   :  { %1584 = vmatpush1.bf16.msra.mxu0 %v3307_v31  ;;  %1666 = vmatpush1.bf16.msra.mxu1 %v3310_v32  ;;  %v3369_v31 = vld [vmem:[#allocation7 + $0x324] ss:$16 sps:$4 sm:$0xff]   ;;  %v3372_v32 = vld [vmem:[#allocation7 + $0x32c] ss:$16 sps:$4 sm:$0xff]  }
 0x14e   :  { %1594 = vmatprep.subr.bf16.mxu0 %v3315_v33  ;;  %1676 = vmatprep.subr.bf16.mxu1 %v3318_v34  ;;  %v3367_v33 = vld [vmem:[#allocation7 + $0x320] ss:$16 sps:$4 sm:$0xff]   ;;  %v3370_v34 = vld [vmem:[#allocation7 + $0x328] ss:$16 sps:$4 sm:$0xff]  }
 0x1a3   :  { %v179_v35 = vpop.f32.mrb[0].mxu0  ;;  %v250_v36 = vpop.f32.mrb[0].mxu1 }
 0x1a4   :  { %v181_v37 = vpop.f32.mrb[1].mxu0  ;;  %v252_v38 = vpop.f32.mrb[1].mxu1 }
 0x1e3   :  { %v699_v39 = vpop.f32.mrb[4].mxu0  ;;  %v740_v40 = vpop.f32.mrb[4].mxu1 }
 0x1e4   :  { %v700_v21 = vadd.f32 %v699_v39, %v179_v35  ;;  %v3846_v28 = vadd.f32 %v740_v40, %v250_v36  ;;  %v701_v41 = vpop.f32.mrb[5].mxu0  ;;  %v742_v42 = vpop.f32.mrb[5].mxu1  ;;  %v3375_v35 = vld [vmem:[#allocation7 + $0x344] ss:$16 sps:$4 sm:$0xff]   ;;  %v3378_v36 = vld [vmem:[#allocation7 + $0x34c] ss:$16 sps:$4 sm:$0xff]  }
 0x1e5   :  { %v702_v43 = vadd.f32 %v701_v41, %v181_v37  ;;  %v743_v44 = vadd.f32 %v742_v42, %v252_v38  ;;  %v703_v45 = vpop.f32.mrb[6].mxu0  ;;  %v744_v46 = vpop.f32.mrb[6].mxu1  ;;  %v3373_v37 = vld [vmem:[#allocation7 + $0x340] ss:$16 sps:$4 sm:$0xff]   ;;  %v3376_v38 = vld [vmem:[#allocation7 + $0x348] ss:$16 sps:$4 sm:$0xff]  }
 0x1e6   :  { %vm747_vm2 = vcmp.gt.f32.partialorder %v700_v21, 0.0  ;;  %v751_v47 = vmul.f32 0.2, %v700_v21  ;;  %v704_v51 = vpop.f32.mrb[7].mxu0  ;;  %v745_v52 = vpop.f32.mrb[7].mxu1  ;;  %vm749_vm5 = vcmp.gt.f32.partialorder %v3846_v28, 0.0 }
 0x1e7   :  { %vm748_vm3 = vcmp.gt.f32.partialorder %v702_v43, 0.0  ;;  %v752_v48 = vmul.f32 0.2, %v702_v43  ;;  %vm750_vm4 = vcmp.gt.f32.partialorder %v743_v44, 0.0  ;;  %v754_v49 = vmul.f32 0.2, %v743_v44 }
 0x1e8   :  { %v755_v50 = vsel %vm747_vm2, %v700_v21, %v751_v47  ;;  %v3381_v39 = vld [vmem:[#allocation7 + $0x364] ss:$16 sps:$4 sm:$0xff]   ;;  %v3384_v40 = vld [vmem:[#allocation7 + $0x36c] ss:$16 sps:$4 sm:$0xff]   ;;  %v3379_v21 = vld [vmem:[#allocation7 + $0x360] ss:$16 sps:$4 sm:$0xff]  }
 0x1e9   :  { %v756_v53 = vsel %vm748_vm3, %v702_v43, %v752_v48  ;;  %v758_v57 = vsel %vm750_vm4, %v743_v44, %v754_v49  ;;  %v759_v58 = vpack.c.bf16 %v755_v50, %v755_v50  ;;  %v3382_v41 = vld [vmem:[#allocation7 + $0x368] ss:$16 sps:$4 sm:$0xff]   ;;  %v3387_v42 = vld [vmem:[#allocation7 + $0x384] ss:$16 sps:$4 sm:$0xff]   ;;  %v3390_v43 = vld [vmem:[#allocation7 + $0x38c] ss:$16 sps:$4 sm:$0xff]  }
 0x1ea   :  { %v760_v54 = vpack.c.bf16 %v756_v53, %v756_v53  ;;  %v762_v61 = vpack.c.bf16 %v758_v57, %v758_v57  ;;  %v3385_v44 = vld [vmem:[#allocation7 + $0x380] ss:$16 sps:$4 sm:$0xff]   ;;  %v3388_v45 = vld [vmem:[#allocation7 + $0x388] ss:$16 sps:$4 sm:$0xff]   ;;  %v3393_v46 = vld [vmem:[#allocation7 + $0x3a4] ss:$16 sps:$4 sm:$0xff]  }
 0x1eb   :  { %v3396_v47 = vld [vmem:[#allocation7 + $0x3ac] ss:$16 sps:$4 sm:$0xff]   ;;  %v3391_v48 = vld [vmem:[#allocation7 + $0x3a0] ss:$16 sps:$4 sm:$0xff]   ;;  %v3394_v49 = vld [vmem:[#allocation7 + $0x3a8] ss:$16 sps:$4 sm:$0xff]  }
 0x1ec   :  { %1585 = vmatprep.mubr.bf16.mxu0 %v760_v54  ;;  %1667 = vmatprep.mubr.bf16.mxu1 %v760_v54  ;;  %v3399_v50 = vld [vmem:[#allocation7 + $0x3c4] ss:$16 sps:$4 sm:$0xff]   ;;  %v3402_v51 = vld [vmem:[#allocation7 + $0x3cc] ss:$16 sps:$4 sm:$0xff]   ;;  %v3397_v52 = vld [vmem:[#allocation7 + $0x3c0] ss:$16 sps:$4 sm:$0xff]  }
 0x1ed   :  { %1586 = vmatmul.mubr.bf16.vlgmr.msra.gmra.mrb[8].mxu0 %v759_v58  ;;  %1668 = vmatmul.mubr.bf16.vlgmr.msra.gmra.mrb[8].mxu1 %v759_v58  ;;  %v3400_v53 = vld [vmem:[#allocation7 + $0x3c8] ss:$16 sps:$4 sm:$0xff]   ;;  %v3405_v54 = vld [vmem:[#allocation7 + $0x3e4] ss:$16 sps:$4 sm:$0xff]   ;;  %v3403_v57 = vld [vmem:[#allocation7 + $0x3e0] ss:$16 sps:$4 sm:$0xff]  }
 0x1ee   :  { %1595 = vmatpush1.bf16.msra.mxu0 %v3313_v55  ;;  %1677 = vmatpush1.bf16.msra.mxu1 %v3316_v56  ;;  %v3408_v55 = vld [vmem:[#allocation7 + $0x3ec] ss:$16 sps:$4 sm:$0xff]   ;;  %v753_v56 = vmul.f32 0.2, %v3846_v28  ;;  %v3406_v58 = vld [vmem:[#allocation7 + $0x3e8] ss:$16 sps:$4 sm:$0xff]  }
 0x1ef   :  { %1626 = vmatprep.mubr.bf16.mxu0 %v762_v61  ;;  %1708 = vmatprep.mubr.bf16.mxu1 %v762_v61 }
 0x1f0   :  { %1596 = vmatprep.subr.bf16.mxu0 %v3321_v59  ;;  %1678 = vmatprep.subr.bf16.mxu1 %v3324_v60  ;;  %v3411_v59 = vld [vmem:[#allocation8 + $0x4] ss:$16 sps:$4 sm:$0xff]   ;;  %v3414_v60 = vld [vmem:[#allocation8 + $0xc] ss:$16 sps:$4 sm:$0xff]   ;;  %v757_v61 = vsel %vm749_vm5, %v3846_v28, %v753_v56  ;;  %v3421_v28 = vld [vmem:[#allocation8 + $0x40] ss:$16 sps:$4 sm:$0xff]  }
 0x1f1   :  { %v3493_v56 = vld [vmem:[#allocation8 + $0x1c0] ss:$16 sps:$4 sm:$0xff]  }
 0x1f2   :  { %1597 = vmatpush1.bf16.msra.mxu0 %v3319_v62  ;;  %1679 = vmatpush1.bf16.msra.mxu1 %v3322_v63  ;;  %v3409_v62 = vld [vmem:[#allocation8] ss:$16 sps:$4 sm:$0xff]   ;;  %v3412_v63 = vld [vmem:[#allocation8 + $0x8] ss:$16 sps:$4 sm:$0xff]  }
 0x1f3   :  { %1598 = vmatprep.subr.bf16.mxu0 %v3327_v0  ;;  %1680 = vmatprep.subr.bf16.mxu1 %v3330_v1  ;;  %v761_v0 = vpack.c.bf16 %v757_v61, %v757_v61  ;;  %v3417_v1 = vld [vmem:[#allocation8 + $0x24] ss:$16 sps:$4 sm:$0xff]   ;;  %v3502_v61 = vld [vmem:[#allocation8 + $0x1e8] ss:$16 sps:$4 sm:$0xff]  }
 0x1f6   :  { %1599 = vmatpush1.bf16.msra.mxu0 %v3325_v2  ;;  %1681 = vmatpush1.bf16.msra.mxu1 %v3328_v3  ;;  %v3420_v2 = vld [vmem:[#allocation8 + $0x2c] ss:$16 sps:$4 sm:$0xff]   ;;  %v3415_v3 = vld [vmem:[#allocation8 + $0x20] ss:$16 sps:$4 sm:$0xff]  }
 0x1f7   :  { %1600 = vmatprep.subr.bf16.mxu0 %v3333_v4  ;;  %1682 = vmatprep.subr.bf16.mxu1 %v3336_v5  ;;  %v3418_v4 = vld [vmem:[#allocation8 + $0x28] ss:$16 sps:$4 sm:$0xff]   ;;  %v3423_v5 = vld [vmem:[#allocation8 + $0x44] ss:$16 sps:$4 sm:$0xff]  }
 0x1fa   :  { %1601 = vmatpush1.bf16.msra.mxu0 %v3331_v6  ;;  %1683 = vmatpush1.bf16.msra.mxu1 %v3334_v7  ;;  %v3426_v6 = vld [vmem:[#allocation8 + $0x4c] ss:$16 sps:$4 sm:$0xff]   ;;  %v3424_v7 = vld [vmem:[#allocation8 + $0x48] ss:$16 sps:$4 sm:$0xff]  }
 0x1fb   :  { %1602 = vmatprep.subr.bf16.mxu0 %v3339_v8  ;;  %1684 = vmatprep.subr.bf16.mxu1 %v3342_v9  ;;  %v3429_v8 = vld [vmem:[#allocation8 + $0x64] ss:$16 sps:$4 sm:$0xff]   ;;  %v3432_v9 = vld [vmem:[#allocation8 + $0x6c] ss:$16 sps:$4 sm:$0xff]  }
 0x1fe   :  { %1603 = vmatpush1.bf16.msra.mxu0 %v3337_v10  ;;  %1685 = vmatpush1.bf16.msra.mxu1 %v3340_v11  ;;  %v3427_v10 = vld [vmem:[#allocation8 + $0x60] ss:$16 sps:$4 sm:$0xff]   ;;  %v3430_v11 = vld [vmem:[#allocation8 + $0x68] ss:$16 sps:$4 sm:$0xff]  }
 0x1ff   :  { %1604 = vmatprep.subr.bf16.mxu0 %v3345_v12  ;;  %1686 = vmatprep.subr.bf16.mxu1 %v3348_v13  ;;  %v3435_v12 = vld [vmem:[#allocation8 + $0x84] ss:$16 sps:$4 sm:$0xff]   ;;  %v3438_v13 = vld [vmem:[#allocation8 + $0x8c] ss:$16 sps:$4 sm:$0xff]  }
 0x202   :  { %1605 = vmatpush1.bf16.msra.mxu0 %v3343_v14  ;;  %1687 = vmatpush1.bf16.msra.mxu1 %v3346_v15  ;;  %v3433_v14 = vld [vmem:[#allocation8 + $0x80] ss:$16 sps:$4 sm:$0xff]   ;;  %v3436_v15 = vld [vmem:[#allocation8 + $0x88] ss:$16 sps:$4 sm:$0xff]  }
 0x203   :  { %1606 = vmatprep.subr.bf16.mxu0 %v3351_v16  ;;  %1688 = vmatprep.subr.bf16.mxu1 %v3354_v17  ;;  %v3441_v16 = vld [vmem:[#allocation8 + $0xa4] ss:$16 sps:$4 sm:$0xff]   ;;  %v3444_v17 = vld [vmem:[#allocation8 + $0xac] ss:$16 sps:$4 sm:$0xff]  }
 0x206   :  { %1607 = vmatpush1.bf16.msra.mxu0 %v3349_v18  ;;  %1689 = vmatpush1.bf16.msra.mxu1 %v3352_v19  ;;  %v3439_v18 = vld [vmem:[#allocation8 + $0xa0] ss:$16 sps:$4 sm:$0xff]   ;;  %v3442_v19 = vld [vmem:[#allocation8 + $0xa8] ss:$16 sps:$4 sm:$0xff]  }
 0x207   :  { %1608 = vmatprep.subr.bf16.mxu0 %v3357_v20  ;;  %1690 = vmatprep.subr.bf16.mxu1 %v3360_v23  ;;  %v3447_v20 = vld [vmem:[#allocation8 + $0xc4] ss:$16 sps:$4 sm:$0xff]   ;;  %v3450_v23 = vld [vmem:[#allocation8 + $0xcc] ss:$16 sps:$4 sm:$0xff]  }
 0x20a   :  { %1609 = vmatpush1.bf16.msra.mxu0 %v3355_v24  ;;  %1691 = vmatpush1.bf16.msra.mxu1 %v3358_v25  ;;  %v3445_v24 = vld [vmem:[#allocation8 + $0xc0] ss:$16 sps:$4 sm:$0xff]   ;;  %v3448_v25 = vld [vmem:[#allocation8 + $0xc8] ss:$16 sps:$4 sm:$0xff]  }
 0x20b   :  { %1610 = vmatprep.subr.bf16.mxu0 %v3363_v26  ;;  %1692 = vmatprep.subr.bf16.mxu1 %v3366_v27  ;;  %v3453_v26 = vld [vmem:[#allocation8 + $0xe4] ss:$16 sps:$4 sm:$0xff]   ;;  %v3456_v27 = vld [vmem:[#allocation8 + $0xec] ss:$16 sps:$4 sm:$0xff]  }
 0x20e   :  { %1611 = vmatpush1.bf16.msra.mxu0 %v3361_v29  ;;  %1693 = vmatpush1.bf16.msra.mxu1 %v3364_v30  ;;  %v3451_v29 = vld [vmem:[#allocation8 + $0xe0] ss:$16 sps:$4 sm:$0xff]   ;;  %v3454_v30 = vld [vmem:[#allocation8 + $0xe8] ss:$16 sps:$4 sm:$0xff]  }
 0x20f   :  { %1612 = vmatprep.subr.bf16.mxu0 %v3369_v31  ;;  %1694 = vmatprep.subr.bf16.mxu1 %v3372_v32  ;;  %v3459_v31 = vld [vmem:[#allocation8 + $0x104] ss:$16 sps:$4 sm:$0xff]   ;;  %v3462_v32 = vld [vmem:[#allocation8 + $0x10c] ss:$16 sps:$4 sm:$0xff]  }
 0x212   :  { %1613 = vmatpush1.bf16.msra.mxu0 %v3367_v33  ;;  %1695 = vmatpush1.bf16.msra.mxu1 %v3370_v34  ;;  %v3457_v33 = vld [vmem:[#allocation8 + $0x100] ss:$16 sps:$4 sm:$0xff]   ;;  %v3460_v34 = vld [vmem:[#allocation8 + $0x108] ss:$16 sps:$4 sm:$0xff]  }
 0x213   :  { %1614 = vmatprep.subr.bf16.mxu0 %v3375_v35  ;;  %1696 = vmatprep.subr.bf16.mxu1 %v3378_v36  ;;  %v3465_v35 = vld [vmem:[#allocation8 + $0x124] ss:$16 sps:$4 sm:$0xff]   ;;  %v3468_v36 = vld [vmem:[#allocation8 + $0x12c] ss:$16 sps:$4 sm:$0xff]  }
 0x216   :  { %1615 = vmatpush1.bf16.msra.mxu0 %v3373_v37  ;;  %1697 = vmatpush1.bf16.msra.mxu1 %v3376_v38  ;;  %v3463_v37 = vld [vmem:[#allocation8 + $0x120] ss:$16 sps:$4 sm:$0xff]   ;;  %v3466_v38 = vld [vmem:[#allocation8 + $0x128] ss:$16 sps:$4 sm:$0xff]  }
 0x217   :  { %1616 = vmatprep.subr.bf16.mxu0 %v3381_v39  ;;  %1698 = vmatprep.subr.bf16.mxu1 %v3384_v40  ;;  %v3471_v39 = vld [vmem:[#allocation8 + $0x144] ss:$16 sps:$4 sm:$0xff]   ;;  %v3474_v40 = vld [vmem:[#allocation8 + $0x14c] ss:$16 sps:$4 sm:$0xff]  }
 0x21a   :  { %1617 = vmatpush1.bf16.msra.mxu0 %v3379_v21  ;;  %1699 = vmatpush1.bf16.msra.mxu1 %v3382_v41  ;;  %v3469_v21 = vld [vmem:[#allocation8 + $0x140] ss:$16 sps:$4 sm:$0xff]   ;;  %v3472_v41 = vld [vmem:[#allocation8 + $0x148] ss:$16 sps:$4 sm:$0xff]  }
 0x21b   :  { %1618 = vmatprep.subr.bf16.mxu0 %v3387_v42  ;;  %1700 = vmatprep.subr.bf16.mxu1 %v3390_v43  ;;  %v3477_v42 = vld [vmem:[#allocation8 + $0x164] ss:$16 sps:$4 sm:$0xff]   ;;  %v3480_v43 = vld [vmem:[#allocation8 + $0x16c] ss:$16 sps:$4 sm:$0xff]  }
 0x21e   :  { %1619 = vmatpush1.bf16.msra.mxu0 %v3385_v44  ;;  %1701 = vmatpush1.bf16.msra.mxu1 %v3388_v45  ;;  %v3475_v44 = vld [vmem:[#allocation8 + $0x160] ss:$16 sps:$4 sm:$0xff]   ;;  %v3478_v45 = vld [vmem:[#allocation8 + $0x168] ss:$16 sps:$4 sm:$0xff]  }
 0x21f   :  { %1620 = vmatprep.subr.bf16.mxu0 %v3393_v46  ;;  %1702 = vmatprep.subr.bf16.mxu1 %v3396_v47  ;;  %v3483_v46 = vld [vmem:[#allocation8 + $0x184] ss:$16 sps:$4 sm:$0xff]   ;;  %v3486_v47 = vld [vmem:[#allocation8 + $0x18c] ss:$16 sps:$4 sm:$0xff]  }
 0x222   :  { %1621 = vmatpush1.bf16.msra.mxu0 %v3391_v48  ;;  %1703 = vmatpush1.bf16.msra.mxu1 %v3394_v49  ;;  %v3481_v48 = vld [vmem:[#allocation8 + $0x180] ss:$16 sps:$4 sm:$0xff]   ;;  %v3484_v49 = vld [vmem:[#allocation8 + $0x188] ss:$16 sps:$4 sm:$0xff]  }
 0x223   :  { %1622 = vmatprep.subr.bf16.mxu0 %v3399_v50  ;;  %1704 = vmatprep.subr.bf16.mxu1 %v3402_v51  ;;  %v3489_v50 = vld [vmem:[#allocation8 + $0x1a4] ss:$16 sps:$4 sm:$0xff]   ;;  %v3492_v51 = vld [vmem:[#allocation8 + $0x1ac] ss:$16 sps:$4 sm:$0xff]  }
 0x226   :  { %1623 = vmatpush1.bf16.msra.mxu0 %v3397_v52  ;;  %1705 = vmatpush1.bf16.msra.mxu1 %v3400_v53  ;;  %v3487_v52 = vld [vmem:[#allocation8 + $0x1a0] ss:$16 sps:$4 sm:$0xff]   ;;  %v3490_v53 = vld [vmem:[#allocation8 + $0x1a8] ss:$16 sps:$4 sm:$0xff]  }
 0x227   :  { %1624 = vmatprep.subr.bf16.mxu0 %v3405_v54  ;;  %1706 = vmatprep.subr.bf16.mxu1 %v3408_v55  ;;  %v3495_v54 = vld [vmem:[#allocation8 + $0x1c4] ss:$16 sps:$4 sm:$0xff]   ;;  %v3498_v55 = vld [vmem:[#allocation8 + $0x1cc] ss:$16 sps:$4 sm:$0xff]  }
 0x22a   :  { %1625 = vmatpush1.bf16.msra.mxu0 %v3403_v57  ;;  %1707 = vmatpush1.bf16.msra.mxu1 %v3406_v58  ;;  %v3496_v57 = vld [vmem:[#allocation8 + $0x1c8] ss:$16 sps:$4 sm:$0xff]   ;;  %v3501_v58 = vld [vmem:[#allocation8 + $0x1e4] ss:$16 sps:$4 sm:$0xff]  }
 0x22b   :  { %2523 = vmatprep.subr.bf16.mxu0 %v3411_v59  ;;  %2605 = vmatprep.subr.bf16.mxu1 %v3414_v60  ;;  %v3504_v59 = vld [vmem:[#allocation8 + $0x1ec] ss:$16 sps:$4 sm:$0xff]   ;;  %v3499_v60 = vld [vmem:[#allocation8 + $0x1e0] ss:$16 sps:$4 sm:$0xff]  }
 0x22d   :  { %1627 = vmatmul.mubr.bf16.vlgmr.msra.gmra.mrb[8].mxu0 %v761_v0  ;;  %1709 = vmatmul.mubr.bf16.vlgmr.msra.gmra.mrb[8].mxu1 %v761_v0  ;;  %v3852_v0 = vsub.s32 0, %v3836_v22 }
 0x22e   :  { %2524 = vmatpush1.bf16.msra.mxu0 %v3409_v62  ;;  %2606 = vmatpush1.bf16.msra.mxu1 %v3412_v63  ;;  %v3507_v62 = vld [vmem:[#allocation8 + $0x204] ss:$16 sps:$4 sm:$0xff]   ;;  %v3510_v63 = vld [vmem:[#allocation8 + $0x20c] ss:$16 sps:$4 sm:$0xff]  }
 0x22f   :  { %2525 = vmatprep.subr.bf16.mxu0 %v3417_v1  ;;  %2607 = vmatprep.subr.bf16.mxu1 %v3420_v2  ;;  %v3857_v1 = vld [vmem:[%s3901_s5] sm:$0xf]  ;;  %v3860_v2 = vsub.s32 1, %v3836_v22 }
 0x232   :  { %2526 = vmatpush1.bf16.msra.mxu0 %v3415_v3  ;;  %2608 = vmatpush1.bf16.msra.mxu1 %v3418_v4  ;;  %v3863_v3 = vsub.s32 3, %v3836_v22  ;;  %v896_v4 = vrot.slane %v3857_v1, %v3852_v0 }
 0x233   :  { %2527 = vmatprep.subr.bf16.mxu0 %v3423_v5  ;;  %2609 = vmatprep.subr.bf16.mxu1 %v3426_v6  ;;  %v900_v5 = vrot.slane %v3857_v1, %v3860_v2 }
 0x234   :  { %v908_v6 = vrot.slane %v3857_v1, %v3863_v3 }
 0x236   :  { %2528 = vmatpush1.bf16.msra.mxu0 %v3421_v28  ;;  %2610 = vmatpush1.bf16.msra.mxu1 %v3424_v7 }
 0x237   :  { %2529 = vmatprep.subr.bf16.mxu0 %v3429_v8  ;;  %2611 = vmatprep.subr.bf16.mxu1 %v3432_v9 }
 0x23a   :  { %2530 = vmatpush1.bf16.msra.mxu0 %v3427_v10  ;;  %2612 = vmatpush1.bf16.msra.mxu1 %v3430_v11 }
 0x23b   :  { %2531 = vmatprep.subr.bf16.mxu0 %v3435_v12  ;;  %2613 = vmatprep.subr.bf16.mxu1 %v3438_v13 }
 0x23e   :  { %2532 = vmatpush1.bf16.msra.mxu0 %v3433_v14  ;;  %2614 = vmatpush1.bf16.msra.mxu1 %v3436_v15 }
 0x23f   :  { %2533 = vmatprep.subr.bf16.mxu0 %v3441_v16  ;;  %2615 = vmatprep.subr.bf16.mxu1 %v3444_v17 }
 0x242   :  { %2534 = vmatpush1.bf16.msra.mxu0 %v3439_v18  ;;  %2616 = vmatpush1.bf16.msra.mxu1 %v3442_v19 }
 0x243   :  { %2535 = vmatprep.subr.bf16.mxu0 %v3447_v20  ;;  %2617 = vmatprep.subr.bf16.mxu1 %v3450_v23 }
 0x246   :  { %2536 = vmatpush1.bf16.msra.mxu0 %v3445_v24  ;;  %2618 = vmatpush1.bf16.msra.mxu1 %v3448_v25  ;;  %v3505_v25 = vld [vmem:[#allocation8 + $0x200] ss:$16 sps:$4 sm:$0xff]  }
 0x247   :  { %2537 = vmatprep.subr.bf16.mxu0 %v3453_v26  ;;  %2619 = vmatprep.subr.bf16.mxu1 %v3456_v27  ;;  %v3508_v26 = vld [vmem:[#allocation8 + $0x208] ss:$16 sps:$4 sm:$0xff]  }
 0x24a   :  { %2538 = vmatpush1.bf16.msra.mxu0 %v3451_v29  ;;  %2620 = vmatpush1.bf16.msra.mxu1 %v3454_v30  ;;  %v3513_v30 = vld [vmem:[#allocation8 + $0x224] ss:$16 sps:$4 sm:$0xff]  }
 0x24b   :  { %2539 = vmatprep.subr.bf16.mxu0 %v3459_v31  ;;  %2621 = vmatprep.subr.bf16.mxu1 %v3462_v32  ;;  %v3516_v31 = vld [vmem:[#allocation8 + $0x22c] ss:$16 sps:$4 sm:$0xff]  }
 0x24e   :  { %2540 = vmatpush1.bf16.msra.mxu0 %v3457_v33  ;;  %2622 = vmatpush1.bf16.msra.mxu1 %v3460_v34  ;;  %v3511_v33 = vld [vmem:[#allocation8 + $0x220] ss:$16 sps:$4 sm:$0xff]   ;;  %v3514_v34 = vld [vmem:[#allocation8 + $0x228] ss:$16 sps:$4 sm:$0xff]  }
 0x24f   :  { %2541 = vmatprep.subr.bf16.mxu0 %v3465_v35  ;;  %2623 = vmatprep.subr.bf16.mxu1 %v3468_v36  ;;  %v3519_v35 = vld [vmem:[#allocation8 + $0x244] ss:$16 sps:$4 sm:$0xff]   ;;  %v3522_v36 = vld [vmem:[#allocation8 + $0x24c] ss:$16 sps:$4 sm:$0xff]  }
 0x252   :  { %2542 = vmatpush1.bf16.msra.mxu0 %v3463_v37  ;;  %2624 = vmatpush1.bf16.msra.mxu1 %v3466_v38  ;;  %v3517_v37 = vld [vmem:[#allocation8 + $0x240] ss:$16 sps:$4 sm:$0xff]   ;;  %v3520_v38 = vld [vmem:[#allocation8 + $0x248] ss:$16 sps:$4 sm:$0xff]  }
 0x253   :  { %2543 = vmatprep.subr.bf16.mxu0 %v3471_v39  ;;  %2625 = vmatprep.subr.bf16.mxu1 %v3474_v40  ;;  %v3525_v39 = vld [vmem:[#allocation8 + $0x264] ss:$16 sps:$4 sm:$0xff]   ;;  %v3528_v40 = vld [vmem:[#allocation8 + $0x26c] ss:$16 sps:$4 sm:$0xff]  }
 0x256   :  { %2544 = vmatpush1.bf16.msra.mxu0 %v3469_v21  ;;  %2626 = vmatpush1.bf16.msra.mxu1 %v3472_v41  ;;  %v3523_v21 = vld [vmem:[#allocation8 + $0x260] ss:$16 sps:$4 sm:$0xff]   ;;  %v3526_v41 = vld [vmem:[#allocation8 + $0x268] ss:$16 sps:$4 sm:$0xff]  }
 0x257   :  { %2545 = vmatprep.subr.bf16.mxu0 %v3477_v42  ;;  %2627 = vmatprep.subr.bf16.mxu1 %v3480_v43  ;;  %v3531_v42 = vld [vmem:[#allocation8 + $0x284] ss:$16 sps:$4 sm:$0xff]   ;;  %v3534_v43 = vld [vmem:[#allocation8 + $0x28c] ss:$16 sps:$4 sm:$0xff]  }
 0x25a   :  { %2546 = vmatpush1.bf16.msra.mxu0 %v3475_v44  ;;  %2628 = vmatpush1.bf16.msra.mxu1 %v3478_v45  ;;  %v3529_v44 = vld [vmem:[#allocation8 + $0x280] ss:$16 sps:$4 sm:$0xff]   ;;  %v3532_v45 = vld [vmem:[#allocation8 + $0x288] ss:$16 sps:$4 sm:$0xff]  }
 0x25b   :  { %2547 = vmatprep.subr.bf16.mxu0 %v3483_v46  ;;  %2629 = vmatprep.subr.bf16.mxu1 %v3486_v47  ;;  %v3537_v46 = vld [vmem:[#allocation8 + $0x2a4] ss:$16 sps:$4 sm:$0xff]   ;;  %v3540_v47 = vld [vmem:[#allocation8 + $0x2ac] ss:$16 sps:$4 sm:$0xff]  }
 0x25e   :  { %2548 = vmatpush1.bf16.msra.mxu0 %v3481_v48  ;;  %2630 = vmatpush1.bf16.msra.mxu1 %v3484_v49  ;;  %v3535_v48 = vld [vmem:[#allocation8 + $0x2a0] ss:$16 sps:$4 sm:$0xff]   ;;  %v3538_v49 = vld [vmem:[#allocation8 + $0x2a8] ss:$16 sps:$4 sm:$0xff]  }
 0x25f   :  { %2549 = vmatprep.subr.bf16.mxu0 %v3489_v50  ;;  %2631 = vmatprep.subr.bf16.mxu1 %v3492_v51  ;;  %v3543_v50 = vld [vmem:[#allocation8 + $0x2c4] ss:$16 sps:$4 sm:$0xff]   ;;  %v3546_v51 = vld [vmem:[#allocation8 + $0x2cc] ss:$16 sps:$4 sm:$0xff]  }
 0x262   :  { %2550 = vmatpush1.bf16.msra.mxu0 %v3487_v52  ;;  %2632 = vmatpush1.bf16.msra.mxu1 %v3490_v53  ;;  %v3541_v52 = vld [vmem:[#allocation8 + $0x2c0] ss:$16 sps:$4 sm:$0xff]   ;;  %v3544_v53 = vld [vmem:[#allocation8 + $0x2c8] ss:$16 sps:$4 sm:$0xff]  }
 0x263   :  { %2551 = vmatprep.subr.bf16.mxu0 %v3495_v54  ;;  %2633 = vmatprep.subr.bf16.mxu1 %v3498_v55  ;;  %v3549_v54 = vld [vmem:[#allocation8 + $0x2e4] ss:$16 sps:$4 sm:$0xff]   ;;  %v3552_v55 = vld [vmem:[#allocation8 + $0x2ec] ss:$16 sps:$4 sm:$0xff]  }
 0x266   :  { %2552 = vmatpush1.bf16.msra.mxu0 %v3493_v56  ;;  %2634 = vmatpush1.bf16.msra.mxu1 %v3496_v57  ;;  %v3547_v56 = vld [vmem:[#allocation8 + $0x2e0] ss:$16 sps:$4 sm:$0xff]   ;;  %v3550_v57 = vld [vmem:[#allocation8 + $0x2e8] ss:$16 sps:$4 sm:$0xff]  }
 0x267   :  { %2553 = vmatprep.subr.bf16.mxu0 %v3501_v58  ;;  %2635 = vmatprep.subr.bf16.mxu1 %v3504_v59  ;;  %v3555_v58 = vld [vmem:[#allocation8 + $0x304] ss:$16 sps:$4 sm:$0xff]   ;;  %v3558_v59 = vld [vmem:[#allocation8 + $0x30c] ss:$16 sps:$4 sm:$0xff]  }
 0x26a   :  { %2554 = vmatpush1.bf16.msra.mxu0 %v3499_v60  ;;  %2636 = vmatpush1.bf16.msra.mxu1 %v3502_v61  ;;  %v3553_v60 = vld [vmem:[#allocation8 + $0x300] ss:$16 sps:$4 sm:$0xff]   ;;  %v3556_v61 = vld [vmem:[#allocation8 + $0x308] ss:$16 sps:$4 sm:$0xff]  }
 0x26b   :  { %2564 = vmatprep.subr.bf16.mxu0 %v3507_v62  ;;  %2646 = vmatprep.subr.bf16.mxu1 %v3510_v63  ;;  %v3561_v62 = vld [vmem:[#allocation8 + $0x324] ss:$16 sps:$4 sm:$0xff]   ;;  %v3564_v63 = vld [vmem:[#allocation8 + $0x32c] ss:$16 sps:$4 sm:$0xff]  }
 0x300   :  { %v1628_v28 = vpop.f32.mrb[8].mxu0  ;;  %v3871_v7 = vpop.f32.mrb[8].mxu1 }
 0x301   :  { %v3085_v8 = vadd.f32 %v1628_v28, %v896_v4  ;;  %v1630_v9 = vpop.f32.mrb[9].mxu0  ;;  %v1712_v10 = vpop.f32.mrb[9].mxu1  ;;  %v3559_v4 = vld [vmem:[#allocation8 + $0x320] ss:$16 sps:$4 sm:$0xff]   ;;  %v3570_v28 = vld [vmem:[#allocation8 + $0x34c] ss:$16 sps:$4 sm:$0xff]  }
 0x302   :  { %v3086_v11 = vadd.f32 %v1630_v9, %v900_v5  ;;  %v3088_v12 = vadd.f32 %v1712_v10, %v908_v6  ;;  %v1632_v13 = vpop.f32.mrb[10].mxu0  ;;  %v1714_v14 = vpop.f32.mrb[10].mxu1  ;;  %v3562_v5 = vld [vmem:[#allocation8 + $0x328] ss:$16 sps:$4 sm:$0xff]   ;;  %v3567_v6 = vld [vmem:[#allocation8 + $0x344] ss:$16 sps:$4 sm:$0xff]  }
 0x303   :  { %vm1717_vm6 = vcmp.gt.f32.partialorder %v3085_v8, 0.0  ;;  %v1721_v15 = vmul.f32 0.2, %v3085_v8  ;;  %v1633_v19 = vpop.f32.mrb[11].mxu0  ;;  %v1715_v20 = vpop.f32.mrb[11].mxu1 }
 0x304   :  { %vm1718_vm7 = vcmp.gt.f32.partialorder %v3086_v11, 0.0  ;;  %v1722_v16 = vmul.f32 0.2, %v3086_v11  ;;  %vm1720_vm8 = vcmp.gt.f32.partialorder %v3088_v12, 0.0  ;;  %v1724_v17 = vmul.f32 0.2, %v3088_v12 }
 0x305   :  { %v1725_v18 = vsel %vm1717_vm6, %v3085_v8, %v1721_v15  ;;  %v3565_v8 = vld [vmem:[#allocation8 + $0x340] ss:$16 sps:$4 sm:$0xff]   ;;  %v3568_v9 = vld [vmem:[#allocation8 + $0x348] ss:$16 sps:$4 sm:$0xff]   ;;  %v3573_v10 = vld [vmem:[#allocation8 + $0x364] ss:$16 sps:$4 sm:$0xff]  }
 0x306   :  { %v1726_v23 = vsel %vm1718_vm7, %v3086_v11, %v1722_v16  ;;  %v1728_v27 = vsel %vm1720_vm8, %v3088_v12, %v1724_v17  ;;  %v1729_v29 = vpack.c.bf16 %v1725_v18, %v1725_v18  ;;  %v3576_v11 = vld [vmem:[#allocation8 + $0x36c] ss:$16 sps:$4 sm:$0xff]   ;;  %v3571_v12 = vld [vmem:[#allocation8 + $0x360] ss:$16 sps:$4 sm:$0xff]   ;;  %v3574_v13 = vld [vmem:[#allocation8 + $0x368] ss:$16 sps:$4 sm:$0xff]  }
 0x307   :  { %v1730_v24 = vpack.c.bf16 %v1726_v23, %v1726_v23  ;;  %v1732_v32 = vpack.c.bf16 %v1728_v27, %v1728_v27  ;;  %v3579_v14 = vld [vmem:[#allocation8 + $0x384] ss:$16 sps:$4 sm:$0xff]   ;;  %v3582_v15 = vld [vmem:[#allocation8 + $0x38c] ss:$16 sps:$4 sm:$0xff]   ;;  %v3874_v16 = vsub.s32 2, %v3836_v22 }
 0x308   :  { %v3577_v17 = vld [vmem:[#allocation8 + $0x380] ss:$16 sps:$4 sm:$0xff]   ;;  %v3580_v18 = vld [vmem:[#allocation8 + $0x388] ss:$16 sps:$4 sm:$0xff]   ;;  %v3585_v19 = vld [vmem:[#allocation8 + $0x3a4] ss:$16 sps:$4 sm:$0xff]  }
 0x309   :  { %2555 = vmatprep.mubr.bf16.mxu0 %v1730_v24  ;;  %2637 = vmatprep.mubr.bf16.mxu1 %v1730_v24  ;;  %v3588_v20 = vld [vmem:[#allocation8 + $0x3ac] ss:$16 sps:$4 sm:$0xff]   ;;  %v904_v23 = vrot.slane %v3857_v1, %v3874_v16  ;;  %v3583_v24 = vld [vmem:[#allocation8 + $0x3a0] ss:$16 sps:$4 sm:$0xff]  }
 0x30a   :  { %2556 = vmatmul.mubr.bf16.vlgmr.msra.gmra.mrb[12].mxu0 %v1729_v29  ;;  %2638 = vmatmul.mubr.bf16.vlgmr.msra.gmra.mrb[12].mxu1 %v1729_v29  ;;  %v3594_v22 = vld [vmem:[#allocation8 + $0x3cc] ss:$16 sps:$4 sm:$0xff]   ;;  %v3589_v29 = vld [vmem:[#allocation8 + $0x3c0] ss:$16 sps:$4 sm:$0xff]  }
 0x30b   :  { %2565 = vmatpush1.bf16.msra.mxu0 %v3505_v25  ;;  %2647 = vmatpush1.bf16.msra.mxu1 %v3508_v26  ;;  %v3586_v25 = vld [vmem:[#allocation8 + $0x3a8] ss:$16 sps:$4 sm:$0xff]   ;;  %v3591_v26 = vld [vmem:[#allocation8 + $0x3c4] ss:$16 sps:$4 sm:$0xff]   ;;  %v3087_v27 = vadd.f32 %v3871_v7, %v904_v23  ;;  %v3595_v1 = vld [vmem:[#allocation8 + $0x3e0] ss:$16 sps:$4 sm:$0xff]  }
 0x30c   :  { %2596 = vmatprep.mubr.bf16.mxu0 %v1732_v32  ;;  %2678 = vmatprep.mubr.bf16.mxu1 %v1732_v32  ;;  %v3600_v32 = vld [vmem:[#allocation8 + $0x3ec] ss:$16 sps:$4 sm:$0xff]  }
 0x30d   :  { %2566 = vmatprep.subr.bf16.mxu0 %v3513_v30  ;;  %2648 = vmatprep.subr.bf16.mxu1 %v3516_v31  ;;  %v3592_v30 = vld [vmem:[#allocation8 + $0x3c8] ss:$16 sps:$4 sm:$0xff]   ;;  %v3597_v31 = vld [vmem:[#allocation8 + $0x3e4] ss:$16 sps:$4 sm:$0xff]   ;;  %vm1719_vm9 = vcmp.gt.f32.partialorder %v3087_v27, 0.0 }
 0x30f   :  { %2567 = vmatpush1.bf16.msra.mxu0 %v3511_v33  ;;  %2649 = vmatpush1.bf16.msra.mxu1 %v3514_v34  ;;  %v1723_v33 = vmul.f32 0.2, %v3087_v27  ;;  %v3598_v34 = vld [vmem:[#allocation8 + $0x3e8] ss:$16 sps:$4 sm:$0xff]  }
 0x310   :  { %2568 = vmatprep.subr.bf16.mxu0 %v3519_v35  ;;  %2650 = vmatprep.subr.bf16.mxu1 %v3522_v36  ;;  %v1861_v36 = vld [vmem:[%s3903_s7] sm:$0xf] }
 0x311   :  { %v1727_v35 = vsel %vm1719_vm9, %v3087_v27, %v1723_v33 }
 0x312   :  { %v1731_v7 = vpack.c.bf16 %v1727_v35, %v1727_v35 }
 0x313   :  { %2569 = vmatpush1.bf16.msra.mxu0 %v3517_v37  ;;  %2651 = vmatpush1.bf16.msra.mxu1 %v3520_v38  ;;  %v1866_v37 = vrot.slane %v1861_v36, %v3852_v0  ;;  %v1874_v38 = vrot.slane %v1861_v36, %v3874_v16 }
 0x314   :  { %2570 = vmatprep.subr.bf16.mxu0 %v3525_v39  ;;  %2652 = vmatprep.subr.bf16.mxu1 %v3528_v40  ;;  %v2699_v39 = vld [vmem:[%s3904_s8] sm:$0xf]  ;;  %v1870_v40 = vrot.slane %v1861_v36, %v3860_v2 }
 0x317   :  { %2571 = vmatpush1.bf16.msra.mxu0 %v3523_v21  ;;  %2653 = vmatpush1.bf16.msra.mxu1 %v3526_v41  ;;  %v1878_v21 = vrot.slane %v1861_v36, %v3863_v3 }
 0x318   :  { %2572 = vmatprep.subr.bf16.mxu0 %v3531_v42  ;;  %2654 = vmatprep.subr.bf16.mxu1 %v3534_v43 }
 0x31b   :  { %2573 = vmatpush1.bf16.msra.mxu0 %v3529_v44  ;;  %2655 = vmatpush1.bf16.msra.mxu1 %v3532_v45  ;;  %v2704_v44 = vrot.slane %v2699_v39, %v3852_v0 }
 0x31c   :  { %2574 = vmatprep.subr.bf16.mxu0 %v3537_v46  ;;  %2656 = vmatprep.subr.bf16.mxu1 %v3540_v47 }
 0x31f   :  { %2575 = vmatpush1.bf16.msra.mxu0 %v3535_v48  ;;  %2657 = vmatpush1.bf16.msra.mxu1 %v3538_v49  ;;  %v2712_v48 = vrot.slane %v2699_v39, %v3874_v16 }
 0x320   :  { %2576 = vmatprep.subr.bf16.mxu0 %v3543_v50  ;;  %2658 = vmatprep.subr.bf16.mxu1 %v3546_v51  ;;  %v2708_v50 = vrot.slane %v2699_v39, %v3860_v2 }
 0x323   :  { %2577 = vmatpush1.bf16.msra.mxu0 %v3541_v52  ;;  %2659 = vmatpush1.bf16.msra.mxu1 %v3544_v53 }
 0x324   :  { %2578 = vmatprep.subr.bf16.mxu0 %v3549_v54  ;;  %2660 = vmatprep.subr.bf16.mxu1 %v3552_v55 }
 0x327   :  { %2579 = vmatpush1.bf16.msra.mxu0 %v3547_v56  ;;  %2661 = vmatpush1.bf16.msra.mxu1 %v3550_v57 }
 0x328   :  { %2580 = vmatprep.subr.bf16.mxu0 %v3555_v58  ;;  %2662 = vmatprep.subr.bf16.mxu1 %v3558_v59 }
 0x32b   :  { %2581 = vmatpush1.bf16.msra.mxu0 %v3553_v60  ;;  %2663 = vmatpush1.bf16.msra.mxu1 %v3556_v61  ;;  %v2716_v61 = vrot.slane %v2699_v39, %v3863_v3 }
 0x32c   :  { %2582 = vmatprep.subr.bf16.mxu0 %v3561_v62  ;;  %2664 = vmatprep.subr.bf16.mxu1 %v3564_v63 }
 0x32f   :  { %2583 = vmatpush1.bf16.msra.mxu0 %v3559_v4  ;;  %2665 = vmatpush1.bf16.msra.mxu1 %v3562_v5 }
 0x330   :  { %2584 = vmatprep.subr.bf16.mxu0 %v3567_v6  ;;  %2666 = vmatprep.subr.bf16.mxu1 %v3570_v28 }
 0x333   :  { %2585 = vmatpush1.bf16.msra.mxu0 %v3565_v8  ;;  %2667 = vmatpush1.bf16.msra.mxu1 %v3568_v9 }
 0x334   :  { %2586 = vmatprep.subr.bf16.mxu0 %v3573_v10  ;;  %2668 = vmatprep.subr.bf16.mxu1 %v3576_v11 }
 0x337   :  { %2587 = vmatpush1.bf16.msra.mxu0 %v3571_v12  ;;  %2669 = vmatpush1.bf16.msra.mxu1 %v3574_v13 }
 0x338   :  { %2588 = vmatprep.subr.bf16.mxu0 %v3579_v14  ;;  %2670 = vmatprep.subr.bf16.mxu1 %v3582_v15  ;;  %v3076_v14 = vld [vmem:[#allocation2] ss:$0 sm:$0xff] }
 0x33b   :  { %2589 = vmatpush1.bf16.msra.mxu0 %v3577_v17  ;;  %2671 = vmatpush1.bf16.msra.mxu1 %v3580_v18 }
 0x33c   :  { %2590 = vmatprep.subr.bf16.mxu0 %v3585_v19  ;;  %2672 = vmatprep.subr.bf16.mxu1 %v3588_v20 }
 0x33f   :  { %2591 = vmatpush1.bf16.msra.mxu0 %v3583_v24  ;;  %2673 = vmatpush1.bf16.msra.mxu1 %v3586_v25 }
 0x340   :  { %2592 = vmatprep.subr.bf16.mxu0 %v3591_v26  ;;  %2674 = vmatprep.subr.bf16.mxu1 %v3594_v22 }
 0x343   :  { %2593 = vmatpush1.bf16.msra.mxu0 %v3589_v29  ;;  %2675 = vmatpush1.bf16.msra.mxu1 %v3592_v30 }
 0x344   :  { %2594 = vmatprep.subr.bf16.mxu0 %v3597_v31  ;;  %2676 = vmatprep.subr.bf16.mxu1 %v3600_v32 }
 0x347   :  { %2595 = vmatpush1.bf16.msra.mxu0 %v3595_v1  ;;  %2677 = vmatpush1.bf16.msra.mxu1 %v3598_v34 }
 0x34a   :  { %2597 = vmatmul.mubr.bf16.vlgmr.msra.gmra.mrb[12].mxu0 %v1731_v7  ;;  %2679 = vmatmul.mubr.bf16.vlgmr.msra.gmra.mrb[12].mxu1 %v1731_v7 }
 0x41d   :  { %v2598_v41 = vpop.f32.mrb[12].mxu0  ;;  %v2680_v42 = vpop.f32.mrb[12].mxu1 }
 0x41e   :  { %v3089_v43 = vadd.f32 %v2598_v41, %v1866_v37  ;;  %v3091_v45 = vadd.f32 %v2680_v42, %v1874_v38  ;;  %v2600_v46 = vpop.f32.mrb[13].mxu0  ;;  %v2682_v47 = vpop.f32.mrb[13].mxu1 }
 0x41f   :  { %v3090_v49 = vadd.f32 %v2600_v46, %v1870_v40  ;;  %v3092_v51 = vadd.f32 %v2682_v47, %v1878_v21  ;;  %v2602_v52 = vpop.f32.mrb[14].mxu0  ;;  %v2684_v53 = vpop.f32.mrb[14].mxu1 }
 0x420   :  { %vm2687_vm10 = vcmp.gt.f32.partialorder %v3089_v43, 0.0  ;;  %v2691_v54 = vmul.f32 0.2, %v3089_v43  ;;  %vm2689_vm11 = vcmp.gt.f32.partialorder %v3091_v45, 0.0  ;;  %v2693_v55 = vmul.f32 0.2, %v3091_v45 }
 0x421   :  { %vm2688_vm12 = vcmp.gt.f32.partialorder %v3090_v49, 0.0  ;;  %v2692_v56 = vmul.f32 0.2, %v3090_v49  ;;  %vm2690_vm13 = vcmp.gt.f32.partialorder %v3092_v51, 0.0  ;;  %v2694_v57 = vmul.f32 0.2, %v3092_v51 }
 0x422   :  { %v2695_v0 = vsel %vm2687_vm10, %v3089_v43, %v2691_v54  ;;  %v2697_v58 = vsel %vm2689_vm11, %v3091_v45, %v2693_v55  ;;  %v2603_v59 = vpop.f32.mrb[15].mxu0  ;;  %v2685_v60 = vpop.f32.mrb[15].mxu1 }
 0x423   :  { %v2721_v62 = vmul.f32 %v2704_v44, %v2695_v0  ;;  %v2696_v2 = vsel %vm2688_vm12, %v3090_v49, %v2692_v56  ;;  %v2698_v63 = vsel %vm2690_vm13, %v3092_v51, %v2694_v57  ;;  %v2723_v4 = vmul.f32 %v2712_v48, %v2697_v58 }
 0x424   :  { %v2722_v5 = vmul.f32 %v2708_v50, %v2696_v2  ;;  %v2724_v28 = vmul.f32 %v2716_v61, %v2698_v63 }
 0x425   :  { %v2726_v6 = vsel %vm2725_vm14, %v2721_v62, 0.0  ;;  %v2729_v10 = vsel %vm2725_vm14, %v2723_v4, 0.0 }
 0x426   :  { %v2727_v8 = vsel %vm2725_vm14, %v2722_v5, 0.0  ;;  %v2731_v12 = vsel %vm2725_vm14, %v2724_v28, 0.0 }
 0x427   :  { %v2728_v9 = vadd.f32 %v2727_v8, %v2726_v6 }
 0x429   :  { %v2730_v11 = vadd.f32 %v2729_v10, %v2728_v9 }
 0x42b   :  { %v2732_v13 = vadd.f32 %v2731_v12, %v2730_v11 }
 0x42d   :  { %2733 = vadd.xlane.f32.xlu0 %v2732_v13 }
 0x4ba   :  { %v2734_v15 = vpop.xlane.xlu0 %2733 }
 0x4bb   :  { %v2742_v16 = vadd.f32 %v3076_v14, %v2734_v15 }
 0x4bd   :  { %2744 = vst.msk [vmem:[%s3906_s10] sm:$0x3] %vm2743_vm15, %v2742_v16 }
 0x4be   :  { %2749 = vsyncpa [#allocation4], 1 }
 0x4bf   :  { %2750 = vsyncpa [#allocation6], 1 }
 0x4c0   :  { %2751 = vsyncpa [#allocation9], 1 }

</bundles_post_ra>
